<compile_context>
chip_gen: v7x
topology: tpu7x:2x2x1
jax: 0.10.0
libtpu: 0.0.40
codegen_flags: <defaults>
</compile_context>

<pallas_src>
import functools
import math

import jax
import jax.numpy as jnp
from jax.experimental import pallas as pl
from jax.experimental.pallas import tpu as pltpu


# ----------------------------------------------------------------------------- #
# helpers mirrored from the PyTorch module
# ----------------------------------------------------------------------------- #
def round_filters(filters, width=None, divisor=None, min_depth=None):
    if width is None:
        return filters
    filters *= width
    min_depth = min_depth or divisor
    new_filters = max(min_depth, int(filters + divisor / 2) // divisor * divisor)
    if new_filters < 0.9 * filters:
        new_filters += divisor
    return int(new_filters)


def round_repeats(repeats, depth=None):
    if depth is None:
        return repeats
    return int(math.ceil(depth * repeats))


LANE = 128


def pad_lanes(n):
    return int(pl.cdiv(n, LANE)) * LANE


def pad_axis(a, axis, target):
    if a.shape[axis] == target:
        return a
    widths = [(0, 0)] * a.ndim
    widths[axis] = (0, target - a.shape[axis])
    return jnp.pad(a, widths)


def _default_vmem_limit():
    # 64 MiB scoped on 128 MiB parts (v5e/v6e), 32 MiB on 64 MiB parts (v7x).
    try:
        cap = getattr(pltpu.get_tpu_info(), "vmem_capacity_bytes", 128 * 1024 * 1024)
        return int(min(64 * 1024 * 1024, cap // 2))
    except Exception:                                              # pragma: no cover
        return 32 * 1024 * 1024


_VMEM_LIMIT = _default_vmem_limit()


def _cparams(*sems):
    return pltpu.CompilerParams(dimension_semantics=sems,
                                vmem_limit_bytes=_VMEM_LIMIT)


def _silu(x):
    return x * jax.nn.sigmoid(x)


# ----------------------------------------------------------------------------- #
# Pallas kernels
# ----------------------------------------------------------------------------- #
def _se_epilogue(pooled, w1_ref, b1_ref, w2_ref, b2_ref):
    # gate = sigmoid(FC2(SiLU(FC1(pooled))))  -- pooled: (1, C) f32, fused per image.
    a = jnp.dot(pooled.astype(jnp.bfloat16), w1_ref[...],
                preferred_element_type=jnp.float32) + b1_ref[...]
    a = _silu(a)
    g = jnp.dot(a.astype(jnp.bfloat16), w2_ref[...],
                preferred_element_type=jnp.float32) + b2_ref[...]
    return jax.nn.sigmoid(g)


def _mm_affine_act_kernel(x_ref, w_ref, s_ref, b_ref, o_ref, *, act):
    # y = act((x @ w) * scale + bias) -- bf16 MXU matmul, f32 accumulate + epilogue.
    y = jnp.dot(x_ref[...].astype(jnp.bfloat16), w_ref[...],
                preferred_element_type=jnp.float32)
    y = y * s_ref[...] + b_ref[...]
    if act == "silu":
        y = _silu(y)
    elif act == "sigmoid":
        y = jax.nn.sigmoid(y)
    o_ref[...] = y.astype(o_ref.dtype)


def _conv_kxk_kernel(*refs, k, stride, Ho, Wo, act, concat_taps, has_se):
    # Full kxk conv for one image + folded BN + activation (+ fused SE gate).
    # x_ref holds the stride**2 space-to-depth phases of the zero-padded image, so
    # every tap is a static, unstrided slice.  When the input channel count is
    # 128-aligned the taps are concatenated along the contraction axis and a single
    # MXU matmul is issued; otherwise (stem, Cin=3) per-tap dots are accumulated.
    x_ref, w_ref, s_ref, b_ref = refs[:4]
    idx = 4
    if has_se:
        sw1_ref, sb1_ref, sw2_ref, sb2_ref = refs[idx:idx + 4]
        idx += 4
    h_ref = refs[idx]
    idx += 1
    g_ref = refs[idx] if has_se else None

    s = stride
    taps = []
    for dh in range(k):
        for dw in range(k):
            phase = (dh % s) * s + (dw % s)
            qh, qw = dh // s, dw // s
            t = x_ref[phase, qh:qh + Ho, qw:qw + Wo, :]            # (Ho, Wo, Cin) bf16
            taps.append(t.reshape(Ho * Wo, t.shape[-1]))

    if concat_taps:
        slab = jnp.concatenate(taps, axis=-1)                      # (Ho*Wo, k*k*Cin)
        y = jnp.dot(slab, w_ref[...], preferred_element_type=jnp.float32)
    else:
        cout = w_ref.shape[-1]
        y = jnp.zeros((Ho * Wo, cout), jnp.float32)
        for t_idx, tap in enumerate(taps):
            y = y + jnp.dot(tap, w_ref[t_idx], preferred_element_type=jnp.float32)

    y = y * s_ref[...] + b_ref[...]
    if act == "silu":
        y = _silu(y)
    h_ref[0] = y.astype(h_ref.dtype)
    if has_se:
        pooled = jnp.mean(y, axis=0, keepdims=True)
        g_ref[0] = _se_epilogue(pooled, sw1_ref, sb1_ref, sw2_ref, sb2_ref)


def _dw_block_kernel(*refs, k, stride, Ho, Wo, Hph, Wph, pad, H, W,
                     has_expand, has_se):
    # (optional expand 1x1 conv + BN + SiLU, computed per phase in VMEM with a spatial
    #  halo mask) -> depthwise kxk conv (VPU MAC over taps, f32 acc) -> BN + SiLU
    # -> (optional fused SE gate).  One image per grid step.
    idx = 0
    x_ref = refs[idx]
    idx += 1
    if has_expand:
        ew_ref, es_ref, eb_ref = refs[idx:idx + 3]
        idx += 3
    dw_ref, s1_ref, b1_ref = refs[idx:idx + 3]
    idx += 3
    if has_se:
        sw1_ref, sb1_ref, sw2_ref, sb2_ref = refs[idx:idx + 4]
        idx += 4
    h_ref = refs[idx]
    idx += 1
    g_ref = refs[idx] if has_se else None

    s = stride
    C = dw_ref.shape[-1]
    acc = jnp.zeros((Ho, Wo, C), jnp.float32)
    for phase in range(s * s):
        ph_h, ph_w = phase // s, phase % s
        xin = x_ref[phase]                                         # (Hph, Wph, Cin) bf16
        if has_expand:
            xm = xin.reshape(Hph * Wph, xin.shape[-1])
            xe = jnp.dot(xm, ew_ref[...], preferred_element_type=jnp.float32)
            xe = _silu(xe * es_ref[...] + eb_ref[...])
            xe = xe.reshape(Hph, Wph, C)
            # zero the conv halo: expand-BN bias + SiLU make padded pixels non-zero.
            rows = jax.lax.broadcasted_iota(jnp.int32, (Hph, Wph), 0) * s + ph_h - pad
            cols = jax.lax.broadcasted_iota(jnp.int32, (Hph, Wph), 1) * s + ph_w - pad
            mask = (rows >= 0) & (rows < H) & (cols >= 0) & (cols < W)
            xe = jnp.where(mask[:, :, None], xe, 0.0)
        else:
            xe = xin                                               # bf16, promoted below
        for dh in range(k):
            for dw in range(k):
                if (dh % s, dw % s) != (ph_h, ph_w):
                    continue
                qh, qw = dh // s, dw // s
                acc = acc + xe[qh:qh + Ho, qw:qw + Wo, :] * dw_ref[dh * k + dw]

    y = _silu(acc * s1_ref[...] + b1_ref[...])
    y2 = y.reshape(Ho * Wo, C)
    h_ref[0] = y2.astype(h_ref.dtype)
    if has_se:
        pooled = jnp.mean(y2, axis=0, keepdims=True)
        g_ref[0] = _se_epilogue(pooled, sw1_ref, sb1_ref, sw2_ref, sb2_ref)


def _proj_bn_kernel(*refs, has_gate, has_res):
    # out = ((h * gate?) @ w_proj) * scale + bias (+ residual?) -- MBConv tail in one pass.
    h_ref, w_ref, s_ref, b_ref = refs[:4]
    i = 4
    g_ref = refs[i] if has_gate else None
    i += int(has_gate)
    r_ref = refs[i] if has_res else None
    i += int(has_res)
    o_ref = refs[i]

    h = h_ref[0].astype(jnp.float32)                               # (tm, C)
    if has_gate:
        h = h * g_ref[0]                                           # (1, C) broadcast
    y = jnp.dot(h.astype(jnp.bfloat16), w_ref[...],
                preferred_element_type=jnp.float32)
    y = y * s_ref[...] + b_ref[...]
    if has_res:
        y = y + r_ref[0].astype(jnp.float32)
    o_ref[0] = y.astype(o_ref.dtype)


def _head_gap_kernel(x_ref, w_ref, s_ref, b_ref, p_ref):
    # head 1x1 conv + folded BN + SiLU + global average pool, one image per grid step.
    y = jnp.dot(x_ref[0], w_ref[...], preferred_element_type=jnp.float32)
    y = y * s_ref[...] + b_ref[...]
    y = _silu(y)
    p_ref[0] = jnp.mean(y, axis=0, keepdims=True)


# ----------------------------------------------------------------------------- #
# Pallas wrappers
# ----------------------------------------------------------------------------- #
_TM = 256  # MXU-friendly row tile; clamped / 8-aligned for small M


def matmul_affine_act(x, w, scale, bias, act="none"):
    """y = act((x @ w) * scale + bias).  x:(M,K), w:(K,N) bf16, scale/bias:(N,) f32."""
    M, K = x.shape
    N = w.shape[1]
    tm = _TM if M >= _TM else int(pl.cdiv(M, 8)) * 8
    Mp = int(pl.cdiv(M, tm)) * tm
    if Mp != M:
        x = jnp.pad(x, ((0, Mp - M), (0, 0)))
    flops = 2 * Mp * K * N
    trans = Mp * N if act in ("silu", "sigmoid") else 0
    bytes_acc = Mp * K * x.dtype.itemsize + K * N * 2 + Mp * N * 4 + 2 * N * 4
    out = pl.pallas_call(
        functools.partial(_mm_affine_act_kernel, act=act),
        out_shape=jax.ShapeDtypeStruct((Mp, N), jnp.float32),
        grid=(Mp // tm,),
        in_specs=[
            pl.BlockSpec((tm, K), lambda i: (i, 0)),
            pl.BlockSpec((K, N), lambda i: (0, 0)),
            pl.BlockSpec((1, N), lambda i: (0, 0)),
            pl.BlockSpec((1, N), lambda i: (0, 0)),
        ],
        out_specs=pl.BlockSpec((tm, N), lambda i: (i, 0)),
        compiler_params=_cparams("parallel"),
        cost_estimate=pl.CostEstimate(flops=int(flops), transcendentals=int(trans),
                                      bytes_accessed=int(bytes_acc)),
    )(x, w, scale.reshape(1, N).astype(jnp.float32),
      bias.reshape(1, N).astype(jnp.float32))
    return out[:M]


def make_phases(x, k, stride):
    """Pad + space-to-depth the input so every conv tap is an unstrided static slice.

    x:(N,H,W,C) -> phases:(N*s*s, Hph, Wph, C) bf16; tap (dh,dw) of output (ho,wo) is
    phases[n*s*s + (dh%s)*s + dw%s, ho+dh//s, wo+dw//s].
    """
    x = x.astype(jnp.bfloat16)
    N, H, W, C = x.shape
    s = stride
    pad = k // 2
    Ho = (H + 2 * pad - k) // s + 1
    Wo = (W + 2 * pad - k) // s + 1
    qmax = (k - 1) // s
    Hph = max(Ho + qmax, -(-(H + 2 * pad) // s))
    Wph = max(Wo + qmax, -(-(W + 2 * pad) // s))
    Hp, Wp = s * Hph, s * Wph
    xp = jnp.pad(x, ((0, 0), (pad, Hp - H - pad), (pad, Wp - W - pad), (0, 0)))
    ph = xp.reshape(N, Hph, s, Wph, s, C)
    ph = jnp.transpose(ph, (0, 2, 4, 1, 3, 5)).reshape(N * s * s, Hph, Wph, C)
    return ph, Ho, Wo, Hph, Wph, pad


def conv_kxk_block(x, w_cat, bn, k, stride, act="silu", se=None):
    """Full kxk conv (im2col-free, tap-concat matmul) + folded BN + act (+ fused SE).
    x:(N,H,W,Cin) bf16, w_cat:(k*k*Cin,Cout) bf16 -> h:(N,Ho*Wo,Cout) bf16, gate|None."""
    N, H, W, Cin = x.shape
    cout = w_cat.shape[-1]
    scale, bias = bn
    ph_arr, Ho, Wo, Hph, Wph, _ = make_phases(x, k, stride)
    ss = stride * stride
    has_se = se is not None
    concat_taps = (Cin % LANE == 0)

    if concat_taps:
        w_arg = w_cat
        w_spec = pl.BlockSpec((k * k * Cin, cout), lambda n: (0, 0))
    else:  # stem path (Cin=3): keep per-tap weight slabs
        w_arg = w_cat.reshape(k * k, Cin, cout)
        w_spec = pl.BlockSpec((k * k, Cin, cout), lambda n: (0, 0, 0))

    in_specs = [
        pl.BlockSpec((ss, Hph, Wph, Cin), lambda n: (n, 0, 0, 0)),
        w_spec,
        pl.BlockSpec((1, cout), lambda n: (0, 0)),
        pl.BlockSpec((1, cout), lambda n: (0, 0)),
    ]
    args = [ph_arr, w_arg, scale.reshape(1, cout), bias.reshape(1, cout)]
    out_shape = [jax.ShapeDtypeStruct((N, Ho * Wo, cout), jnp.bfloat16)]
    out_specs = [pl.BlockSpec((1, Ho * Wo, cout), lambda n: (n, 0, 0))]
    if has_se:
        cse = se["se1_w"].shape[1]
        in_specs += [pl.BlockSpec((cout, cse), lambda n: (0, 0)),
                     pl.BlockSpec((1, cse), lambda n: (0, 0)),
                     pl.BlockSpec((cse, cout), lambda n: (0, 0)),
                     pl.BlockSpec((1, cout), lambda n: (0, 0))]
        args += [se["se1_w"], se["se1_b"].reshape(1, cse),
                 se["se2_w"], se["se2_b"].reshape(1, cout)]
        out_shape.append(jax.ShapeDtypeStruct((N, 1, cout), jnp.float32))
        out_specs.append(pl.BlockSpec((1, 1, cout), lambda n: (n, 0, 0)))

    flops = 2 * N * Ho * Wo * (k * k * Cin) * cout
    trans = N * Ho * Wo * cout if act == "silu" else 0
    bytes_acc = ph_arr.size * 2 + w_cat.size * 2 + N * Ho * Wo * cout * 2

    results = pl.pallas_call(
        functools.partial(_conv_kxk_kernel, k=k, stride=stride, Ho=Ho, Wo=Wo,
                          act=act, concat_taps=concat_taps, has_se=has_se),
        out_shape=tuple(out_shape),
        grid=(N,),
        in_specs=in_specs,
        out_specs=tuple(out_specs),
        compiler_params=_cparams("parallel"),
        cost_estimate=pl.CostEstimate(flops=int(flops), transcendentals=int(trans),
                                      bytes_accessed=int(bytes_acc)),
    )(*args)
    if has_se:
        h, gate = results
    else:
        (h,) = results
        gate = None
    return h, gate, Ho, Wo


def dw_block(x, p, k, stride, has_expand, has_se):
    """(expand 1x1 + BN0 + SiLU)? + depthwise kxk + BN1 + SiLU (+ SE gate), fused.
    x:(N,H,W,Cin) bf16 -> h:(N,Ho*Wo,C) bf16, gate:(N,1,C) f32 | None."""
    N, H, W, Cin = x.shape
    C = p["dw_w"].shape[-1]
    ph_arr, Ho, Wo, Hph, Wph, pad = make_phases(x, k, stride)
    ss = stride * stride
    s1, b1 = p["bn1"]

    in_specs = [pl.BlockSpec((ss, Hph, Wph, Cin), lambda n: (n, 0, 0, 0))]
    args = [ph_arr]
    if has_expand:
        s0, b0 = p["bn0"]
        in_specs += [pl.BlockSpec((Cin, C), lambda n: (0, 0)),
                     pl.BlockSpec((1, C), lambda n: (0, 0)),
                     pl.BlockSpec((1, C), lambda n: (0, 0))]
        args += [p["exp_w"], s0.reshape(1, C), b0.reshape(1, C)]
    in_specs += [pl.BlockSpec((k * k, 1, 1, C), lambda n: (0, 0, 0, 0)),
                 pl.BlockSpec((1, 1, C), lambda n: (0, 0, 0)),
                 pl.BlockSpec((1, 1, C), lambda n: (0, 0, 0))]
    args += [p["dw_w"], s1.reshape(1, 1, C), b1.reshape(1, 1, C)]

    out_shape = [jax.ShapeDtypeStruct((N, Ho * Wo, C), jnp.bfloat16)]
    out_specs = [pl.BlockSpec((1, Ho * Wo, C), lambda n: (n, 0, 0))]
    if has_se:
        cse = p["se1_w"].shape[1]
        in_specs += [pl.BlockSpec((C, cse), lambda n: (0, 0)),
                     pl.BlockSpec((1, cse), lambda n: (0, 0)),
                     pl.BlockSpec((cse, C), lambda n: (0, 0)),
                     pl.BlockSpec((1, C), lambda n: (0, 0))]
        args += [p["se1_w"], p["se1_b"].reshape(1, cse),
                 p["se2_w"], p["se2_b"].reshape(1, C)]
        out_shape.append(jax.ShapeDtypeStruct((N, 1, C), jnp.float32))
        out_specs.append(pl.BlockSpec((1, 1, C), lambda n: (n, 0, 0)))

    flops = (2 * N * ss * Hph * Wph * Cin * C if has_expand else 0) \
            + 2 * N * k * k * Ho * Wo * C
    trans = N * Ho * Wo * C + (N * ss * Hph * Wph * C if has_expand else 0)
    bytes_acc = (ph_arr.size * 2 + N * Ho * Wo * C * 2
                 + sum(int(a.size) * a.dtype.itemsize for a in args[1:]))

    results = pl.pallas_call(
        functools.partial(_dw_block_kernel, k=k, stride=stride, Ho=Ho, Wo=Wo,
                          Hph=Hph, Wph=Wph, pad=pad, H=H, W=W,
                          has_expand=has_expand, has_se=has_se),
        out_shape=tuple(out_shape),
        grid=(N,),
        in_specs=in_specs,
        out_specs=tuple(out_specs),
        compiler_params=_cparams("parallel"),
        cost_estimate=pl.CostEstimate(flops=int(flops), transcendentals=int(trans),
                                      bytes_accessed=int(bytes_acc)),
    )(*args)
    if has_se:
        h, gate = results
    else:
        (h,) = results
        gate = None
    return h, gate, Ho, Wo


def proj_bn_fused(h, w, scale, bias, gate=None, residual=None):
    """out = ((h * gate?) @ w) * scale + bias (+ residual?).  h:(N,HW,C) bf16, w bf16."""
    N, HW, C = h.shape
    cout = w.shape[1]
    tm = _TM if HW >= _TM else int(pl.cdiv(HW, 8)) * 8
    HWp = int(pl.cdiv(HW, tm)) * tm
    if HWp != HW:
        h = jnp.pad(h, ((0, 0), (0, HWp - HW), (0, 0)))
        if residual is not None:
            residual = jnp.pad(residual, ((0, 0), (0, HWp - HW), (0, 0)))
    has_gate = gate is not None
    has_res = residual is not None
    in_specs = [
        pl.BlockSpec((1, tm, C), lambda n, t: (n, t, 0)),
        pl.BlockSpec((C, cout), lambda n, t: (0, 0)),
        pl.BlockSpec((1, cout), lambda n, t: (0, 0)),
        pl.BlockSpec((1, cout), lambda n, t: (0, 0)),
    ]
    args = [h, w, scale.reshape(1, cout), bias.reshape(1, cout)]
    if has_gate:
        in_specs.append(pl.BlockSpec((1, 1, C), lambda n, t: (n, 0, 0)))
        args.append(gate)
    if has_res:
        in_specs.append(pl.BlockSpec((1, tm, cout), lambda n, t: (n, t, 0)))
        args.append(residual)
    flops = 2 * N * HWp * C * cout
    bytes_acc = N * HWp * (C + cout) * 2 + C * cout * 2 + 2 * cout * 4
    out = pl.pallas_call(
        functools.partial(_proj_bn_kernel, has_gate=has_gate, has_res=has_res),
        out_shape=jax.ShapeDtypeStruct((N, HWp, cout), jnp.bfloat16),
        grid=(N, HWp // tm),
        in_specs=in_specs,
        out_specs=pl.BlockSpec((1, tm, cout), lambda n, t: (n, t, 0)),
        compiler_params=_cparams("parallel", "parallel"),
        cost_estimate=pl.CostEstimate(flops=int(flops), transcendentals=0,
                                      bytes_accessed=int(bytes_acc)),
    )(*args)
    return out[:, :HW]


def head_bn_silu_gap(x, w, scale, bias):
    """x:(N,HW,C) bf16, w:(C,Ch) bf16 -> pooled:(N,1,Ch) f32 = GAP(SiLU(BN(x @ w)))."""
    N, HW, C = x.shape
    ch = w.shape[1]
    return pl.pallas_call(
        _head_gap_kernel,
        out_shape=jax.ShapeDtypeStruct((N, 1, ch), jnp.float32),
        grid=(N,),
        in_specs=[
            pl.BlockSpec((1, HW, C), lambda n: (n, 0, 0)),
            pl.BlockSpec((C, ch), lambda n: (0, 0)),
            pl.BlockSpec((1, ch), lambda n: (0, 0)),
            pl.BlockSpec((1, ch), lambda n: (0, 0)),
        ],
        out_specs=pl.BlockSpec((1, 1, ch), lambda n: (n, 0, 0)),
        compiler_params=_cparams("parallel"),
        cost_estimate=pl.CostEstimate(flops=int(2 * N * HW * C * ch),
                                      transcendentals=int(N * HW * ch),
                                      bytes_accessed=int(N * HW * C * 2 + C * ch * 2
                                                         + N * ch * 4)),
    )(x, w, scale.reshape(1, ch), bias.reshape(1, ch))


# ----------------------------------------------------------------------------- #
# weight layout transforms (PyTorch conv layout -> kernel layout, lane-padded)
# ----------------------------------------------------------------------------- #
def conv_w_to_cat(w, cin_p, cout_p):
    """(Cout,Cin,kh,kw) -> tap-concatenated matmul weights (kh*kw*cin_p, cout_p) bf16."""
    cout, cin, kh, kw = w.shape
    t = jnp.transpose(w, (2, 3, 1, 0))                   # (kh, kw, cin, cout)
    t = pad_axis(pad_axis(t, 2, cin_p), 3, cout_p)
    return t.reshape(kh * kw * cin_p, cout_p).astype(jnp.bfloat16)


def conv1x1_to_mat(w, cin_p, cout_p):
    """(Cout,Cin,1,1) -> (cin_p, cout_p) bf16."""
    t = jnp.transpose(w[:, :, 0, 0])                     # (cin, cout)
    return pad_axis(pad_axis(t, 0, cin_p), 1, cout_p).astype(jnp.bfloat16)


def dwconv_w_to_taps(w, c_p):
    """(C,1,kh,kw) -> (kh*kw, 1, 1, c_p) f32 (depthwise VPU path stays f32)."""
    c, _, kh, kw = w.shape
    t = jnp.transpose(w[:, 0], (1, 2, 0)).reshape(kh * kw, 1, 1, c)
    return pad_axis(t, 3, c_p)


# ----------------------------------------------------------------------------- #
# deterministic parameter initialization
# ----------------------------------------------------------------------------- #
class ParamGen:
    def __init__(self, key):
        self._key = key

    def normal(self, shape, scale=0.1):
        self._key, sub = jax.random.split(self._key)
        return scale * jax.random.normal(sub, shape, dtype=jnp.float32)


def init_bn(pg, c, c_p, eps=1e-5):
    gamma = 1.0 + pg.normal((c,), 0.05)
    beta = pg.normal((c,), 0.05)
    mean = pg.normal((c,), 0.05)
    var = 1.0 + jnp.abs(pg.normal((c,), 0.05))
    scale = gamma / jnp.sqrt(var + eps)
    bias = beta - mean * scale
    # zero-padded lanes -> padded output channels are exactly 0 everywhere downstream
    return pad_axis(scale, 0, c_p), pad_axis(bias, 0, c_p)


def init_mbconv(pg, cfg):
    in_c, out_c, k = cfg["in_channel"], cfg["out_channel"], cfg["kernel_size"]
    exp = cfg["expand_ratio"]
    channel = in_c * exp
    in_p, ch_p, out_p = pad_lanes(in_c), pad_lanes(channel), pad_lanes(out_c)
    p = {}
    if cfg["fused"]:
        p["fused_w"] = conv_w_to_cat(pg.normal((channel, in_c, k, k), 0.15), in_p, ch_p)
    else:
        if exp != 1:
            p["exp_w"] = conv1x1_to_mat(pg.normal((channel, in_c, 1, 1), 0.2), in_p, ch_p)
            p["bn0"] = init_bn(pg, channel, ch_p)
        p["dw_w"] = dwconv_w_to_taps(pg.normal((channel, 1, k, k), 0.2), ch_p)
    p["bn1"] = init_bn(pg, channel, ch_p)
    if cfg["se"] is not None:
        se_c = max(1, int(in_c * cfg["se"]))
        p["se1_w"] = pad_axis(jnp.transpose(pg.normal((se_c, channel), 0.2)),
                              0, ch_p).astype(jnp.bfloat16)
        p["se1_b"] = pg.normal((se_c,), 0.05)
        p["se2_w"] = pad_axis(jnp.transpose(pg.normal((channel, se_c), 0.2)),
                              1, ch_p).astype(jnp.bfloat16)
        p["se2_b"] = pad_axis(pg.normal((channel,), 0.05), 0, ch_p)
    p["proj_w"] = conv1x1_to_mat(pg.normal((out_c, channel, 1, 1), 0.2), ch_p, out_p)
    p["bnp"] = init_bn(pg, out_c, out_p)
    return p


def build_model(pg, n_class, block_configs, width=None, divisor=None,
                min_depth=None, depth=None, stem_channel=8, head_channel=32):
    params = {}
    stem_channel = round_filters(stem_channel, width, divisor, min_depth)
    stem_p = pad_lanes(stem_channel)
    params["stem_w"] = conv_w_to_cat(pg.normal((stem_channel, 3, 3, 3), 0.2), 3, stem_p)
    params["stem_bn"] = init_bn(pg, stem_channel, stem_p)

    block_cfgs = []
    config = None
    for config in block_configs:
        config = dict(config)
        config["in_channel"] = round_filters(config["in_channel"], width, divisor, min_depth)
        config["out_channel"] = round_filters(config["out_channel"], width, divisor, min_depth)
        n_repeat = round_repeats(config.pop("n_repeat"), depth)
        block_cfgs.append(dict(config))
        if n_repeat > 1:
            config["in_channel"] = config["out_channel"]
            config["stride"] = 1
        for _ in range(n_repeat - 1):
            block_cfgs.append(dict(config))

    params["blocks"] = [init_mbconv(pg, cfg) for cfg in block_cfgs]

    out_channel = config["out_channel"]
    out_p = pad_lanes(out_channel)
    head_channel = round_filters(head_channel, width, divisor, min_depth)
    head_p = pad_lanes(head_channel)
    params["head_w"] = conv1x1_to_mat(pg.normal((head_channel, out_channel, 1, 1), 0.2),
                                      out_p, head_p)
    params["head_bn"] = init_bn(pg, head_channel, head_p)
    params["logit_w_t"] = pad_axis(jnp.transpose(pg.normal((n_class, head_channel), 0.2)),
                                   0, head_p).astype(jnp.bfloat16)
    params["logit_b"] = pg.normal((n_class,), 0.05)
    return params, block_cfgs


# ----------------------------------------------------------------------------- #
# forward pass
# ----------------------------------------------------------------------------- #
def mbconv_forward(x, p, cfg):
    # x: (N, H, W, Cin_padded) bf16
    N, H, W, Cin_p = x.shape
    k, stride = cfg["kernel_size"], cfg["stride"]
    use_se = cfg["se"] is not None
    use_skip = cfg["skip"] and stride == 1 and cfg["in_channel"] == cfg["out_channel"]

    if cfg["fused"]:
        h, gate, Ho, Wo = conv_kxk_block(x, p["fused_w"], p["bn1"], k, stride,
                                         act="silu", se=(p if use_se else None))
    else:
        h, gate, Ho, Wo = dw_block(x, p, k, stride,
                                   has_expand=(cfg["expand_ratio"] != 1), has_se=use_se)

    residual = x.reshape(N, H * W, Cin_p) if use_skip else None
    sp, bp = p["bnp"]
    out = proj_bn_fused(h, p["proj_w"], sp, bp, gate=gate, residual=residual)
    out_p = p["proj_w"].shape[1]
    # TODO(synk): DropPath is identity (p=0, inference); no stochastic branch.
    return out.reshape(N, Ho, Wo, out_p)


def efficientnet_forward(x_nchw, params, block_cfgs, n_class):
    x = jnp.transpose(x_nchw, (0, 2, 3, 1)).astype(jnp.bfloat16)   # NCHW -> NHWC bf16
    N = x.shape[0]

    # stem: 3x3 stride-2 conv + BN + SiLU (im2col-free, phases-based kernel, no GAP)
    h, _, Ho, Wo = conv_kxk_block(x, params["stem_w"], params["stem_bn"], 3, 2,
                                  act="silu", se=None)
    stem_p = params["stem_w"].shape[-1]
    x = h.reshape(N, Ho, Wo, stem_p)

    for cfg, bp in zip(block_cfgs, params["blocks"]):
        x = mbconv_forward(x, bp, cfg)

    # head: 1x1 conv + BN + SiLU + global average pool (fused)
    N, H, W, C = x.shape
    hs, hb = params["head_bn"]
    head_p = params["head_w"].shape[1]
    pooled = head_bn_silu_gap(x.reshape(N, H * W, C), params["head_w"], hs, hb)
    pooled = pooled.reshape(N, head_p)

    # dropout(p=0) -> identity
    logits = matmul_affine_act(
        pooled, params["logit_w_t"],
        jnp.ones((n_class,), jnp.float32), params["logit_b"], act="none")
    return logits                                                  # (N, n_class)


# ----------------------------------------------------------------------------- #
# main
# ----------------------------------------------------------------------------- #
if __name__ == "__main__":
    N_CLASS = 10
    BLOCK_CONFIGS = [
        dict(in_channel=8, out_channel=8, kernel_size=3, stride=1,
             expand_ratio=1, se=0.25, skip=True, fused=False, drop_path=0, n_repeat=1),
        dict(in_channel=8, out_channel=16, kernel_size=3, stride=2,
             expand_ratio=4, se=0.25, skip=True, fused=False, drop_path=0, n_repeat=2),
        dict(in_channel=16, out_channel=16, kernel_size=3, stride=1,
             expand_ratio=2, se=None, skip=True, fused=True, drop_path=0, n_repeat=1),
    ]

    root = jax.random.PRNGKey(0)
    k_in, k_par = jax.random.split(root)
    x = jax.random.normal(k_in, (2, 3, 16, 16), dtype=jnp.float32)   # NCHW like PyTorch

    pg = ParamGen(k_par)
    params, block_cfgs = build_model(pg, N_CLASS, BLOCK_CONFIGS,
                                     stem_channel=8, head_channel=32)

    logits = efficientnet_forward(x, params, block_cfgs, N_CLASS)
    logits = jax.block_until_ready(logits)

    assert logits.shape == (2, N_CLASS)
    assert bool(jnp.all(jnp.isfinite(logits)))
    print("KERNEL_OK")
</pallas_src>

<mosaic_0001>
module attributes {stable_mosaic.version = 11 : i64} {
  func.func @_conv_kxk_kernel(%arg0: i32, %arg1: memref<4x9x9x3xbf16, #tpu.memory_space<vmem>>, %arg2: memref<9x3x128xbf16, #tpu.memory_space<vmem>>, %arg3: memref<1x128xf32, #tpu.memory_space<vmem>>, %arg4: memref<1x128xf32, #tpu.memory_space<vmem>>, %arg5: memref<1x64x128xbf16, #tpu.memory_space<vmem>>) attributes {dimension_semantics = [#tpu.dimension_semantics<parallel>], iteration_bounds = array<i64: 2>, scalar_prefetch = 0 : i64, scratch_operands = 0 : i64, tpu.core_type = #tpu.core_type<tc>, window_params = [{transform_indices = @transform_0, window_bounds = array<i64: 4, 9, 9, 3>}, {pipeline_mode = #tpu.pipeline_mode<synchronous>, transform_indices = @transform_1, window_bounds = array<i64: 9, 3, 128>}, {pipeline_mode = #tpu.pipeline_mode<synchronous>, transform_indices = @transform_2, window_bounds = array<i64: 1, 128>}, {pipeline_mode = #tpu.pipeline_mode<synchronous>, transform_indices = @transform_3, window_bounds = array<i64: 1, 128>}, {transform_indices = @transform_4, window_bounds = array<i64: 1, 64, 128>}]} {
    %c0 = arith.constant 0 : index
    %c0_0 = arith.constant 0 : index
    %c0_1 = arith.constant 0 : index
    %c0_2 = arith.constant 0 : index
    %0 = vector.load %arg1[%c0, %c0_0, %c0_1, %c0_2] : memref<4x9x9x3xbf16, #tpu.memory_space<vmem>>, vector<1x8x8x3xbf16>
    %1 = vector.shape_cast %0 : vector<1x8x8x3xbf16> to vector<8x8x3xbf16>
    %2 = vector.shape_cast %1 : vector<8x8x3xbf16> to vector<64x3xbf16>
    %c1 = arith.constant 1 : index
    %c0_3 = arith.constant 0 : index
    %c0_4 = arith.constant 0 : index
    %c0_5 = arith.constant 0 : index
    %3 = vector.load %arg1[%c1, %c0_3, %c0_4, %c0_5] : memref<4x9x9x3xbf16, #tpu.memory_space<vmem>>, vector<1x8x8x3xbf16>
    %4 = vector.shape_cast %3 : vector<1x8x8x3xbf16> to vector<8x8x3xbf16>
    %5 = vector.shape_cast %4 : vector<8x8x3xbf16> to vector<64x3xbf16>
    %c0_6 = arith.constant 0 : index
    %c0_7 = arith.constant 0 : index
    %c1_8 = arith.constant 1 : index
    %c0_9 = arith.constant 0 : index
    %6 = vector.load %arg1[%c0_6, %c0_7, %c1_8, %c0_9] : memref<4x9x9x3xbf16, #tpu.memory_space<vmem>>, vector<1x8x8x3xbf16>
    %7 = vector.shape_cast %6 : vector<1x8x8x3xbf16> to vector<8x8x3xbf16>
    %8 = vector.shape_cast %7 : vector<8x8x3xbf16> to vector<64x3xbf16>
    %c2 = arith.constant 2 : index
    %c0_10 = arith.constant 0 : index
    %c0_11 = arith.constant 0 : index
    %c0_12 = arith.constant 0 : index
    %9 = vector.load %arg1[%c2, %c0_10, %c0_11, %c0_12] : memref<4x9x9x3xbf16, #tpu.memory_space<vmem>>, vector<1x8x8x3xbf16>
    %10 = vector.shape_cast %9 : vector<1x8x8x3xbf16> to vector<8x8x3xbf16>
    %11 = vector.shape_cast %10 : vector<8x8x3xbf16> to vector<64x3xbf16>
    %c3 = arith.constant 3 : index
    %c0_13 = arith.constant 0 : index
    %c0_14 = arith.constant 0 : index
    %c0_15 = arith.constant 0 : index
    %12 = vector.load %arg1[%c3, %c0_13, %c0_14, %c0_15] : memref<4x9x9x3xbf16, #tpu.memory_space<vmem>>, vector<1x8x8x3xbf16>
    %13 = vector.shape_cast %12 : vector<1x8x8x3xbf16> to vector<8x8x3xbf16>
    %14 = vector.shape_cast %13 : vector<8x8x3xbf16> to vector<64x3xbf16>
    %c2_16 = arith.constant 2 : index
    %c0_17 = arith.constant 0 : index
    %c1_18 = arith.constant 1 : index
    %c0_19 = arith.constant 0 : index
    %15 = vector.load %arg1[%c2_16, %c0_17, %c1_18, %c0_19] : memref<4x9x9x3xbf16, #tpu.memory_space<vmem>>, vector<1x8x8x3xbf16>
    %16 = vector.shape_cast %15 : vector<1x8x8x3xbf16> to vector<8x8x3xbf16>
    %17 = vector.shape_cast %16 : vector<8x8x3xbf16> to vector<64x3xbf16>
    %c0_20 = arith.constant 0 : index
    %c1_21 = arith.constant 1 : index
    %c0_22 = arith.constant 0 : index
    %c0_23 = arith.constant 0 : index
    %18 = vector.load %arg1[%c0_20, %c1_21, %c0_22, %c0_23] : memref<4x9x9x3xbf16, #tpu.memory_space<vmem>>, vector<1x8x8x3xbf16>
    %19 = vector.shape_cast %18 : vector<1x8x8x3xbf16> to vector<8x8x3xbf16>
    %20 = vector.shape_cast %19 : vector<8x8x3xbf16> to vector<64x3xbf16>
    %c1_24 = arith.constant 1 : index
    %c1_25 = arith.constant 1 : index
    %c0_26 = arith.constant 0 : index
    %c0_27 = arith.constant 0 : index
    %21 = vector.load %arg1[%c1_24, %c1_25, %c0_26, %c0_27] : memref<4x9x9x3xbf16, #tpu.memory_space<vmem>>, vector<1x8x8x3xbf16>
    %22 = vector.shape_cast %21 : vector<1x8x8x3xbf16> to vector<8x8x3xbf16>
    %23 = vector.shape_cast %22 : vector<8x8x3xbf16> to vector<64x3xbf16>
    %c0_28 = arith.constant 0 : index
    %c1_29 = arith.constant 1 : index
    %c1_30 = arith.constant 1 : index
    %c0_31 = arith.constant 0 : index
    %24 = vector.load %arg1[%c0_28, %c1_29, %c1_30, %c0_31] : memref<4x9x9x3xbf16, #tpu.memory_space<vmem>>, vector<1x8x8x3xbf16>
    %25 = vector.shape_cast %24 : vector<1x8x8x3xbf16> to vector<8x8x3xbf16>
    %26 = vector.shape_cast %25 : vector<8x8x3xbf16> to vector<64x3xbf16>
    %cst = arith.constant 0.000000e+00 : f32
    %27 = vector.broadcast %cst : f32 to vector<64x128xf32>
    %c0_32 = arith.constant 0 : index
    %c0_33 = arith.constant 0 : index
    %c0_34 = arith.constant 0 : index
    %28 = vector.load %arg2[%c0_32, %c0_33, %c0_34] : memref<9x3x128xbf16, #tpu.memory_space<vmem>>, vector<1x3x128xbf16>
    %29 = vector.shape_cast %28 : vector<1x3x128xbf16> to vector<3x128xbf16>
    %cst_35 = arith.constant dense<0.000000e+00> : vector<64x128xf32>
    %30 = tpu.matmul %2, %29, %cst_35 {dimension_numbers = #tpu.dot_dimension_numbers<[1], [0], [0], [1], [0, 0, 1, 1], [], []>} : vector<64x3xbf16>, vector<3x128xbf16>, vector<64x128xf32> -> vector<64x128xf32>
    %31 = arith.addf %27, %30 : vector<64x128xf32>
    %c1_36 = arith.constant 1 : index
    %c0_37 = arith.constant 0 : index
    %c0_38 = arith.constant 0 : index
    %32 = vector.load %arg2[%c1_36, %c0_37, %c0_38] : memref<9x3x128xbf16, #tpu.memory_space<vmem>>, vector<1x3x128xbf16>
    %33 = vector.shape_cast %32 : vector<1x3x128xbf16> to vector<3x128xbf16>
    %cst_39 = arith.constant dense<0.000000e+00> : vector<64x128xf32>
    %34 = tpu.matmul %5, %33, %cst_39 {dimension_numbers = #tpu.dot_dimension_numbers<[1], [0], [0], [1], [0, 0, 1, 1], [], []>} : vector<64x3xbf16>, vector<3x128xbf16>, vector<64x128xf32> -> vector<64x128xf32>
    %35 = arith.addf %31, %34 : vector<64x128xf32>
    %c2_40 = arith.constant 2 : index
    %c0_41 = arith.constant 0 : index
    %c0_42 = arith.constant 0 : index
    %36 = vector.load %arg2[%c2_40, %c0_41, %c0_42] : memref<9x3x128xbf16, #tpu.memory_space<vmem>>, vector<1x3x128xbf16>
    %37 = vector.shape_cast %36 : vector<1x3x128xbf16> to vector<3x128xbf16>
    %cst_43 = arith.constant dense<0.000000e+00> : vector<64x128xf32>
    %38 = tpu.matmul %8, %37, %cst_43 {dimension_numbers = #tpu.dot_dimension_numbers<[1], [0], [0], [1], [0, 0, 1, 1], [], []>} : vector<64x3xbf16>, vector<3x128xbf16>, vector<64x128xf32> -> vector<64x128xf32>
    %39 = arith.addf %35, %38 : vector<64x128xf32>
    %c3_44 = arith.constant 3 : index
    %c0_45 = arith.constant 0 : index
    %c0_46 = arith.constant 0 : index
    %40 = vector.load %arg2[%c3_44, %c0_45, %c0_46] : memref<9x3x128xbf16, #tpu.memory_space<vmem>>, vector<1x3x128xbf16>
    %41 = vector.shape_cast %40 : vector<1x3x128xbf16> to vector<3x128xbf16>
    %cst_47 = arith.constant dense<0.000000e+00> : vector<64x128xf32>
    %42 = tpu.matmul %11, %41, %cst_47 {dimension_numbers = #tpu.dot_dimension_numbers<[1], [0], [0], [1], [0, 0, 1, 1], [], []>} : vector<64x3xbf16>, vector<3x128xbf16>, vector<64x128xf32> -> vector<64x128xf32>
    %43 = arith.addf %39, %42 : vector<64x128xf32>
    %c4 = arith.constant 4 : index
    %c0_48 = arith.constant 0 : index
    %c0_49 = arith.constant 0 : index
    %44 = vector.load %arg2[%c4, %c0_48, %c0_49] : memref<9x3x128xbf16, #tpu.memory_space<vmem>>, vector<1x3x128xbf16>
    %45 = vector.shape_cast %44 : vector<1x3x128xbf16> to vector<3x128xbf16>
    %cst_50 = arith.constant dense<0.000000e+00> : vector<64x128xf32>
    %46 = tpu.matmul %14, %45, %cst_50 {dimension_numbers = #tpu.dot_dimension_numbers<[1], [0], [0], [1], [0, 0, 1, 1], [], []>} : vector<64x3xbf16>, vector<3x128xbf16>, vector<64x128xf32> -> vector<64x128xf32>
    %47 = arith.addf %43, %46 : vector<64x128xf32>
    %c5 = arith.constant 5 : index
    %c0_51 = arith.constant 0 : index
    %c0_52 = arith.constant 0 : index
    %48 = vector.load %arg2[%c5, %c0_51, %c0_52] : memref<9x3x128xbf16, #tpu.memory_space<vmem>>, vector<1x3x128xbf16>
    %49 = vector.shape_cast %48 : vector<1x3x128xbf16> to vector<3x128xbf16>
    %cst_53 = arith.constant dense<0.000000e+00> : vector<64x128xf32>
    %50 = tpu.matmul %17, %49, %cst_53 {dimension_numbers = #tpu.dot_dimension_numbers<[1], [0], [0], [1], [0, 0, 1, 1], [], []>} : vector<64x3xbf16>, vector<3x128xbf16>, vector<64x128xf32> -> vector<64x128xf32>
    %51 = arith.addf %47, %50 : vector<64x128xf32>
    %c6 = arith.constant 6 : index
    %c0_54 = arith.constant 0 : index
    %c0_55 = arith.constant 0 : index
    %52 = vector.load %arg2[%c6, %c0_54, %c0_55] : memref<9x3x128xbf16, #tpu.memory_space<vmem>>, vector<1x3x128xbf16>
    %53 = vector.shape_cast %52 : vector<1x3x128xbf16> to vector<3x128xbf16>
    %cst_56 = arith.constant dense<0.000000e+00> : vector<64x128xf32>
    %54 = tpu.matmul %20, %53, %cst_56 {dimension_numbers = #tpu.dot_dimension_numbers<[1], [0], [0], [1], [0, 0, 1, 1], [], []>} : vector<64x3xbf16>, vector<3x128xbf16>, vector<64x128xf32> -> vector<64x128xf32>
    %55 = arith.addf %51, %54 : vector<64x128xf32>
    %c7 = arith.constant 7 : index
    %c0_57 = arith.constant 0 : index
    %c0_58 = arith.constant 0 : index
    %56 = vector.load %arg2[%c7, %c0_57, %c0_58] : memref<9x3x128xbf16, #tpu.memory_space<vmem>>, vector<1x3x128xbf16>
    %57 = vector.shape_cast %56 : vector<1x3x128xbf16> to vector<3x128xbf16>
    %cst_59 = arith.constant dense<0.000000e+00> : vector<64x128xf32>
    %58 = tpu.matmul %23, %57, %cst_59 {dimension_numbers = #tpu.dot_dimension_numbers<[1], [0], [0], [1], [0, 0, 1, 1], [], []>} : vector<64x3xbf16>, vector<3x128xbf16>, vector<64x128xf32> -> vector<64x128xf32>
    %59 = arith.addf %55, %58 : vector<64x128xf32>
    %c8 = arith.constant 8 : index
    %c0_60 = arith.constant 0 : index
    %c0_61 = arith.constant 0 : index
    %60 = vector.load %arg2[%c8, %c0_60, %c0_61] : memref<9x3x128xbf16, #tpu.memory_space<vmem>>, vector<1x3x128xbf16>
    %61 = vector.shape_cast %60 : vector<1x3x128xbf16> to vector<3x128xbf16>
    %cst_62 = arith.constant dense<0.000000e+00> : vector<64x128xf32>
    %62 = tpu.matmul %26, %61, %cst_62 {dimension_numbers = #tpu.dot_dimension_numbers<[1], [0], [0], [1], [0, 0, 1, 1], [], []>} : vector<64x3xbf16>, vector<3x128xbf16>, vector<64x128xf32> -> vector<64x128xf32>
    %63 = arith.addf %59, %62 : vector<64x128xf32>
    %c0_63 = arith.constant 0 : index
    %c0_64 = arith.constant 0 : index
    %64 = vector.load %arg3[%c0_63, %c0_64] : memref<1x128xf32, #tpu.memory_space<vmem>>, vector<1x128xf32>
    %65 = vector.broadcast %64 : vector<1x128xf32> to vector<64x128xf32>
    %66 = arith.mulf %63, %65 : vector<64x128xf32>
    %c0_65 = arith.constant 0 : index
    %c0_66 = arith.constant 0 : index
    %67 = vector.load %arg4[%c0_65, %c0_66] : memref<1x128xf32, #tpu.memory_space<vmem>>, vector<1x128xf32>
    %68 = vector.broadcast %67 : vector<1x128xf32> to vector<64x128xf32>
    %69 = arith.addf %66, %68 : vector<64x128xf32>
    %70 = arith.negf %69 : vector<64x128xf32>
    %71 = math.exp %70 : vector<64x128xf32>
    %cst_67 = arith.constant 1.000000e+00 : f32
    %72 = vector.broadcast %cst_67 : f32 to vector<64x128xf32>
    %73 = arith.addf %72, %71 : vector<64x128xf32>
    %74 = arith.divf %72, %73 : vector<64x128xf32>
    %75 = arith.mulf %69, %74 : vector<64x128xf32>
    %76 = arith.truncf %75 : vector<64x128xf32> to vector<64x128xbf16>
    %c0_68 = arith.constant 0 : index
    %c0_69 = arith.constant 0 : index
    %c0_70 = arith.constant 0 : index
    %77 = vector.load %arg5[%c0_68, %c0_69, %c0_70] : memref<1x64x128xbf16, #tpu.memory_space<vmem>>, vector<1x64x128xbf16>
    %78 = vector.shape_cast %77 : vector<1x64x128xbf16> to vector<64x128xbf16>
    %79 = vector.shape_cast %76 : vector<64x128xbf16> to vector<1x64x128xbf16>
    tpu.vector_store %arg5[%c0_68, %c0_69, %c0_70], %79 {strides = array<i32>} : memref<1x64x128xbf16, #tpu.memory_space<vmem>>, vector<1x64x128xbf16>,
    return
  }
  func.func @transform_0(%arg0: i32) -> (i32, i32, i32, i32) {
    %c0_i32 = arith.constant 0 : i32
    %c0_i32_0 = arith.constant 0 : i32
    %c0_i32_1 = arith.constant 0 : i32
    %c0_i32_2 = arith.constant 0 : i32
    return %arg0, %c0_i32, %c0_i32_0, %c0_i32_1 : i32, i32, i32, i32
  }
  func.func @transform_1(%arg0: i32) -> (i32, i32, i32) {
    %c0_i32 = arith.constant 0 : i32
    %c0_i32_0 = arith.constant 0 : i32
    %c0_i32_1 = arith.constant 0 : i32
    %c0_i32_2 = arith.constant 0 : i32
    return %c0_i32, %c0_i32_0, %c0_i32_1 : i32, i32, i32
  }
  func.func @transform_2(%arg0: i32) -> (i32, i32) {
    %c0_i32 = arith.constant 0 : i32
    %c0_i32_0 = arith.constant 0 : i32
    %c0_i32_1 = arith.constant 0 : i32
    return %c0_i32, %c0_i32_0 : i32, i32
  }
  func.func @transform_3(%arg0: i32) -> (i32, i32) {
    %c0_i32 = arith.constant 0 : i32
    %c0_i32_0 = arith.constant 0 : i32
    %c0_i32_1 = arith.constant 0 : i32
    return %c0_i32, %c0_i32_0 : i32, i32
  }
  func.func @transform_4(%arg0: i32) -> (i32, i32, i32) {
    %c0_i32 = arith.constant 0 : i32
    %c0_i32_0 = arith.constant 0 : i32
    %c0_i32_1 = arith.constant 0 : i32
    return %arg0, %c0_i32, %c0_i32_0 : i32, i32, i32
  }
}

</mosaic_0001>

<bundles_post_ra>
// kernel: tpu_custom_call.1
= control target key start
LH: loop header
LB: loop body
LE: loop exit
PB: predicated region body
PF: predicated region fallthrough
CT: control target
= control target key end

     0   :  { %9 = vsyncpa [#allocation3], 0  ;;  %s2864_s0 = inlined_call_operand.vmem [shape: bf16[8,9,9,3], index: 0, kind: input, shape index: {}]   ;;  %s2865_s1 = inlined_call_operand.vmem [shape: bf16[9,3,128], index: 1, kind: input, shape index: {}]   ;;  %s2866_s2 = inlined_call_operand.vmem [shape: f32[1,128], index: 2, kind: input, shape index: {}]   ;;  %s2867_s3 = inlined_call_operand.vmem [shape: f32[1,128], index: 3, kind: input, shape index: {}]   ;;  %s2868_s4 = inlined_call_operand.hbm [shape: bf16[2,64,128], index: 4, kind: output, shape index: {}]  }
   0x1   :  { %11 = vsyncpa [#allocation3 + $0x1], 0  ;;  %s2365_s15 = smov 0   ;;  %s2367_s16 = smov 0  }
   0x2   :  { %s2369_s17 = smov 0   ;;  %s2371_s18 = smov 0  }
   0x3 LB: > { %s2386_s19 = sadd.s32 4294967295, %s2334_s18   ;;  %s1774_s20 = sadd.s32 4294967294, %s2334_s18   ;;  %s2334_s18 = sphi %s2371_s18, %s2876_s18   ;;  %s2330_s17 = sphi %s2369_s17, %s2875_s17   ;;  %s2326_s16 = sphi %s2367_s16, %s2874_s16   ;;  %s2322_s15 = sphi %s2365_s15, %s2873_s15  }
   0x4   : > { %s2390_s21 = sadd.s32 1, %s2334_s18   ;;  %s113_s22 = sadd.s32 1, %s2330_s17 }
   0x5   : > { %s110_s23 = ssub.s32 %s2334_s18, %s2390_s21  ;;  %p123_p0 = scmp.ne.s32.totalorder %s2330_s17, %s2326_s16 }
   0x6   : > { %p111_p1 = scmp.eq.s32.totalorder %s110_s23, 0  ;;  %p124_p2 = scmp.eq.s32.totalorder %s2386_s19, 1 }
   0x7   : > { %p129_p3 = scmp.ne.s32.totalorder %s2326_s16, %s2322_s15  ;;  %p130_p4 = scmp.eq.s32.totalorder %s1774_s20, 1 }
   0x8   : > { %s2401_s24 = scalar_select %p111_p1, %s2330_s17, %s113_s22  }
   0x9   : > { %p2403_p5 = por %p124_p2, %p123_p0  ;;  %p2407_p6 = por %p130_p4, %p129_p3 }
   0xa   : > { %p1777_p7 = scmp.ge.s32.totalorder %s2334_s18, 1  ;;  %p167_p8 = scmp.lt.s32.totalorder %s2334_s18, 3 }
   0xc   : > { %p168_p9 = pnand %p1777_p7, %p167_p8 }
   0xd   : > { %v1837_v0 = vld [vmem:[%s2865_s1 + $0x2] sm:$0x3] (!%p168_p9)  ;;  %vm654_vm0 = vcmask (!%p168_p9), 1040384   ;;  %vm655_vm1 = vcmask (!%p168_p9), 1041408   ;;  %s1779_s29 = sshll.u32 (!%p168_p9), %s2386_s19, 2  ;;  %v2336_v1 = vmov (!%p168_p9), 65535  }
   0xe   : > { %171 = sbr.rel (%p168_p9) target bundleno = 377 (0x179), region = 36  ;;  %v656_v2 = vsel (!%p168_p9), %vm654_vm0, 4294967295, %v2336_v1  ;;  %v1872_v3 = vld [vmem:[%s2865_s1 + $0x8] sm:$0x3] (!%p168_p9)  ;;  %p195_p10 = scmp.lt.s32.totalorder (!%p168_p9), %s1779_s29, 7  ;;  %vm641_vm2 = vcmask (!%p168_p9), 23552  }
   0xf   : > { %v2420_v4 = vsel (!%p168_p9), %vm655_vm1, %v656_v2, 0  ;;  %v618_v5 = vld [vmem:[%s2865_s1] sm:$0x3] (!%p168_p9)  ;;  %v1881_v6 = vld [vmem:[%s2865_s1 + $0xa] sm:$0x3] (!%p168_p9)  ;;  %s191_s11 = sand.u32 (!%p168_p9), 1, %s2326_s16  }
  0x10   : > { %v659_v7 = vand.u32 (!%p168_p9), %v1837_v0, %v2420_v4  ;;  %v2430_v8 = vand.u32 (!%p168_p9), %v1872_v3, %v2420_v4  ;;  %v759_v9 = vand.u32 (!%p168_p9), %v2420_v4, %v618_v5  ;;  %v1175_v10 = vand.u32 (!%p168_p9), %v1881_v6, %v2420_v4  ;;  %v1890_v11 = vld [vmem:[%s2865_s1 + $0xc] sm:$0x3] (!%p168_p9)  ;;  %v1854_v12 = vld [vmem:[%s2865_s1 + $0x4] sm:$0x3] (!%p168_p9)  ;;  %v1899_v1 = vld [vmem:[%s2865_s1 + $0xe] sm:$0x3] (!%p168_p9) }
  0x11   : > { %vm227_vm3 = vsmask.f32 (!%p168_p9), 3328  ;;  %v2454_v17 = vand.u32 (!%p168_p9), %v1890_v11, %v2420_v4  ;;  %v2457_v18 = vand.u32 (!%p168_p9), %v1854_v12, %v2420_v4  ;;  %vm228_vm4 = vsmask.f32 (!%p168_p9), 7440  ;;  %s1778_s12 = sshll.u32 (!%p168_p9), %s191_s11, 5  ;;  %s1948_s14 = sshll.u32 (!%p168_p9), %s2386_s19, 9 }
  0x12   : > { %2017 = vmatprep.subr.bf16.mxu1 (!%p168_p9), %v659_v7  ;;  %2057 = vmatprep.subr.bf16.mxu0 (!%p168_p9), %v2430_v8  ;;  %vm2493_vm5 = vmor (!%p168_p9), %vm227_vm3, %vm228_vm4  ;;  %s2817_s27 = scalar_lea.hbm (!%p168_p9), %s2868_s4, %s1948_s14  ;;  %s2823_s28 = scalar_lea.sflag (!%p168_p9), [#allocation3], %s191_s11 }
  0x13   : > { %2018 = vmatpush3.bf16.msra.mxu1 (!%p168_p9), %v659_v7  ;;  %2058 = vmatpush3.bf16.msra.mxu0 (!%p168_p9), %v2430_v8  ;;  %v1863_v7 = vld [vmem:[%s2865_s1 + $0x6] sm:$0x3] (!%p168_p9) }
  0x14   : > { %2027 = vmatprep.subr.bf16.mxu1 (!%p168_p9), %v759_v9  ;;  %2067 = vmatprep.subr.bf16.mxu0 (!%p168_p9), %v1175_v10 }
  0x15   : > { %s2878_s29 = smov (!%p195_p10, %s1779_s29), 7 }
  0x16   : > { %s2173_s10 = smul.u32 72, %s2878_s29  ;;  %s2337_s29 = smov [#allocation2]  }
  0x17   : > { %s2276_s30 = sshll.u32 %s2337_s29, 4  ;;  %s2277_s30 = int_to_ptr.vmem [resolvable:$false] %s2276_s30 }
  0x18   : > { %s2439_s13 = scalar_lea.vmem %s2864_s0, %s2173_s10  ;;  %s2278_s5 = scalar_lea.vmem %s2277_s30, 1024 }
  0x19   : > { %v2216_v13 = vld [vmem:[%s2439_s13 + $0x48] ss:$8 sps:$4 sm:$0xff]   ;;  %v2217_v14 = vld [vmem:[%s2439_s13 + $0xd8] ss:$8 sps:$4 sm:$0xff]   ;;  %v1805_v23 = vld [vmem:[%s2439_s13 + $0x94] sm:$0x1] }
  0x1a   : > { %2019 = vmatprep.mubr.msk.bf16.mxu1 %vm641_vm2, %v2216_v13  ;;  %v2218_v15 = vld [vmem:[%s2439_s13 + $0x58] ss:$8 sps:$4 sm:$0xff]   ;;  %2059 = vmatprep.mubr.msk.bf16.mxu0 %vm641_vm2, %v2217_v14  ;;  %v2219_v16 = vld [vmem:[%s2439_s13 + $0xe8] ss:$8 sps:$4 sm:$0xff]   ;;  %v1806_v24 = vld [vmem:[%s2439_s13 + $0x9c] sm:$0x1] }
  0x1b   : > { %2020 = vmatmul.mubr.msk.bf16.vlgmr.msra.gmra.mrb[0].mxu1 %vm641_vm2, %v2218_v15  ;;  %v2220_v19 = vld [vmem:[%s2439_s13 + $0x68] ss:$8 sps:$4 sm:$0xff]   ;;  %2060 = vmatmul.mubr.msk.bf16.vlgmr.msra.gmra.mrb[0].mxu0 %vm641_vm2, %v2219_v16  ;;  %v2221_v20 = vld [vmem:[%s2439_s13 + $0x78] ss:$8 sps:$4 sm:$0xff]   ;;  %v378_v27 = vshll.u32 %v1805_v23, 16  ;;  %v392_v30 = vshll.u32 %v1806_v24, 16  ;;  %v2521_v16 = vand.u32 %v1899_v1, %v2420_v4 }
  0x1c   : > { %2028 = vmatpush3.bf16.msra.mxu1 %v759_v9  ;;  %2068 = vmatpush3.bf16.msra.mxu0 %v1175_v10  ;;  %v2465_v21 = vld [vmem:[%s2439_s13 + $0x90] sm:$0xf]  ;;  %v2468_v22 = vld [vmem:[%s2439_s13 + $0x98] sm:$0xf]  ;;  %v2479_v31 = vld [vmem:[%s2439_s13 + $0xa0] sm:$0xf] }
  0x1d   : > { %2023 = vmatprep.mubr.msk.bf16.mxu1 %vm641_vm2, %v2220_v19  ;;  %v369_v25 = vshrl.u32 %v2465_v21, 16  ;;  %v372_v26 = vshll.u32 %v2465_v21, 16  ;;  %v383_v28 = vshrl.u32 %v2468_v22, 16  ;;  %2077 = vmatprep.subr.bf16.mxu0 %v2454_v17  ;;  %v386_v29 = vshll.u32 %v2468_v22, 16  ;;  %v2482_v32 = vld [vmem:[%s2439_s13 + $0xa8] sm:$0xf] }
  0x1e   : > { %2037 = vmatprep.subr.bf16.mxu1 %v2457_v18  ;;  %v380_v35 = vrot.slane %v378_v27, 5  ;;  %v1807_v37 = vld [vmem:[%s2439_s13 + $0xa4] sm:$0x1]  ;;  %v394_v39 = vrot.slane %v392_v30, 5  ;;  %v1808_v40 = vld [vmem:[%s2439_s13 + $0xac] sm:$0x1] }
  0x1f   : > { %v371_v33 = vrot.slane %v369_v25, 4  ;;  %v374_v34 = vrot.slane %v372_v26, 5  ;;  %v385_v36 = vrot.slane %v383_v28, 4  ;;  %v388_v38 = vrot.slane %v386_v29, 5  ;;  %v202_v59 = vld [vmem:[%s2439_s13] sm:$0xf] }
  0x20   : > { %v397_v41 = vshrl.u32 %v2479_v31, 16  ;;  %v400_v42 = vshll.u32 %v2479_v31, 16  ;;  %v406_v44 = vshll.u32 %v1807_v37, 16  ;;  %v411_v45 = vshrl.u32 %v2482_v32, 16  ;;  %v203_v62 = vld [vmem:[%s2439_s13 + $0x8] sm:$0xf] }
  0x21   : > { %v375_v43 = vor.u32 %v374_v34, %v371_v33  ;;  %v414_v46 = vshll.u32 %v2482_v32, 16  ;;  %v389_v48 = vor.u32 %v388_v38, %v385_v36  ;;  %v420_v51 = vshll.u32 %v1808_v40, 16  ;;  %v2507_v6 = vld [vmem:[%s2439_s13 + $0x10] sm:$0xf]  ;;  %v2513_v12 = vld [vmem:[%s2439_s13 + $0x18] sm:$0xf] }
  0x22   : > { %v399_v49 = vrot.slane %v397_v41, 4  ;;  %v402_v50 = vrot.slane %v400_v42, 5  ;;  %v413_v53 = vrot.slane %v411_v45, 4  ;;  %v408_v57 = vrot.slane %v406_v44, 5  ;;  %v2516_v13 = vld [vmem:[%s2439_s13 + $0xb0] sm:$0xf] }
  0x23   : > { %2024 = vmatmul.mubr.msk.bf16.gmra.mrb[4].mxu1 %vm641_vm2, %v2221_v20  ;;  %v376_v52 = vrot.slane %v375_v43, 4  ;;  %v416_v54 = vrot.slane %v414_v46, 5  ;;  %v390_v55 = vrot.slane %v389_v48, 4  ;;  %v422_v58 = vrot.slane %v420_v51, 5  ;;  %v2531_v24 = vld [vmem:[%s2439_s13 + $0xb8] sm:$0xf] }
  0x24   : > { %v403_v56 = vor.u32 %v402_v50, %v399_v49  ;;  %v231_v63 = vshrl.u32 %v202_v59, 16  ;;  %v234_v0 = vshll.u32 %v202_v59, 16  ;;  %v245_v5 = vshrl.u32 %v203_v62, 16  ;;  %v1809_v25 = vld [vmem:[%s2439_s13 + $0xb4] sm:$0x1] }
  0x25   : > { %v381_v60 = vsel %vm2493_vm5, %v376_v52, %v380_v35  ;;  %v417_v61 = vor.u32 %v416_v54, %v413_v53  ;;  %v395_v2 = vsel %vm2493_vm5, %v390_v55, %v394_v39  ;;  %v248_v11 = vshll.u32 %v203_v62, 16  ;;  %v1810_v30 = vld [vmem:[%s2439_s13 + $0xbc] sm:$0x1]  ;;  %v2545_v34 = vld [vmem:[%s2439_s13 + $0xc0] sm:$0xf] }
  0x26   : > { %v404_v3 = vrot.slane %v403_v56, 4  ;;  %v1882_v9 = vcombine.low %v381_v60, %v395_v2  ;;  %v1846_v15 = vcombine.low %v202_v59, %v203_v62  ;;  %v2526_v20 = vrot.slane %v231_v63, 4  ;;  %v1811_v39 = vld [vmem:[%s2439_s13 + $0xc4] sm:$0x1]  ;;  %v2560_v46 = vld [vmem:[%s2439_s13 + $0xc8] sm:$0xf] }
  0x27   : > { %v418_v10 = vrot.slane %v417_v61, 4  ;;  %v2528_v23 = vrot.slane %v234_v0, 5  ;;  %v2535_v26 = vand.u32 %v1863_v7, %v2420_v4  ;;  %v2537_v28 = vrot.slane %v245_v5, 4  ;;  %v1812_v53 = vld [vmem:[%s2439_s13 + $0xcc] sm:$0x1] }
  0x28   : > { %v409_v14 = vsel %vm2493_vm5, %v404_v3, %v408_v57  ;;  %2069 = vmatprep.mubr.msk.bf16.mxu0 %vm641_vm2, %v1882_v9  ;;  %2029 = vmatprep.mubr.msk.bf16.mxu1 %vm641_vm2, %v1846_v15  ;;  %v1847_v29 = vcombine.low %v2507_v6, %v2513_v12  ;;  %v425_v33 = vshrl.u32 %v2516_v13, 16  ;;  %v2547_v35 = vrot.slane %v248_v11, 5  ;;  %v206_v1 = vld [vmem:[%s2439_s13 + $0x20] sm:$0xf]  ;;  %v207_v7 = vld [vmem:[%s2439_s13 + $0x28] sm:$0xf] }
  0x29   : > { %v423_v19 = vsel %vm2493_vm5, %v418_v10, %v422_v58  ;;  %v259_v36 = vshrl.u32 %v2507_v6, 16  ;;  %v262_v37 = vshll.u32 %v2507_v6, 16  ;;  %v428_v38 = vshll.u32 %v2516_v13, 16 }
  0x2a   : > { %v1883_v27 = vcombine.low %v409_v14, %v423_v19  ;;  %v427_v40 = vrot.slane %v425_v33, 4  ;;  %v434_v41 = vshll.u32 %v1809_v25, 16  ;;  %v439_v42 = vshrl.u32 %v2531_v24, 16 }
  0x2b   : > { %2030 = vmatmul.mubr.msk.bf16.vlgmr.msra.gmra.mrb[0].mxu1 %vm641_vm2, %v1847_v29  ;;  %v442_v43 = vshll.u32 %v2531_v24, 16  ;;  %v430_v44 = vrot.slane %v428_v38, 5  ;;  %v448_v45 = vshll.u32 %v1810_v30, 16  ;;  %v453_v48 = vshrl.u32 %v2545_v34, 16  ;;  %v209_v29 = vld [vmem:[%s2439_s13 + $0x38] sm:$0xf] }
  0x2c   : > { %2070 = vmatmul.mubr.msk.bf16.vlgmr.msra.gmra.mrb[0].mxu0 %vm641_vm2, %v1883_v27  ;;  %2038 = vmatpush3.bf16.msra.mxu1 %v2457_v18  ;;  %v456_v49 = vshll.u32 %v2545_v34, 16  ;;  %v273_v50 = vshrl.u32 %v2513_v12, 16  ;;  %v441_v51 = vrot.slane %v439_v42, 4  ;;  %v462_v54 = vshll.u32 %v1811_v39, 16  ;;  %v208_v27 = vld [vmem:[%s2439_s13 + $0x30] sm:$0xf] }
  0x2d   : > { %2078 = vmatpush3.bf16.msra.mxu0 %v2454_v17  ;;  %v444_v52 = vrot.slane %v442_v43, 5  ;;  %2047 = vmatprep.subr.bf16.mxu1 %v2535_v26  ;;  %v431_v17 = vor.u32 %v430_v44, %v427_v40  ;;  %v436_v18 = vrot.slane %v434_v41, 5  ;;  %v455_v55 = vrot.slane %v453_v48, 4  ;;  %v2589_v43 = vld [vmem:[%s2439_s13 + $0x8] sm:$0xf] }
  0x2e   : > { %2087 = vmatprep.subr.bf16.mxu0 %v2521_v16  ;;  %v458_v56 = vrot.slane %v456_v49, 5  ;;  %v450_v58 = vrot.slane %v448_v45, 5  ;;  %v467_v59 = vshrl.u32 %v2560_v46, 16  ;;  %v470_v60 = vshll.u32 %v2560_v46, 16 }
  0x2f   : > { %v445_v57 = vor.u32 %v444_v52, %v441_v51  ;;  %v276_v61 = vshll.u32 %v2513_v12, 16  ;;  %v432_v62 = vrot.slane %v431_v17, 4  ;;  %v476_v0 = vshll.u32 %v1812_v53, 16  ;;  %v2594_v51 = vld [vmem:[%s2439_s13 + $0x10] sm:$0xf] }
  0x30   : > { %v459_v63 = vor.u32 %v458_v56, %v455_v55  ;;  %v464_v3 = vrot.slane %v462_v54, 5  ;;  %v469_v5 = vrot.slane %v467_v59, 4  ;;  %v472_v6 = vrot.slane %v470_v60, 5  ;;  %v219_v59 = vld [vmem:[%s2439_s13 + $0x4] sm:$0x1] }
  0x31   : > { %v446_v2 = vrot.slane %v445_v57, 4  ;;  %v2573_v9 = vrot.slane %v259_v36, 4  ;;  %v2575_v10 = vrot.slane %v262_v37, 5  ;;  %v437_v11 = vsel %vm2493_vm5, %v432_v62, %v436_v18  ;;  %v1908_v37 = vld [vmem:[%s2865_s1 + $0x10] sm:$0x3] }
  0x32   : > { %v460_v14 = vrot.slane %v459_v63, 4  ;;  %v473_v15 = vor.u32 %v472_v6, %v469_v5  ;;  %v478_v19 = vrot.slane %v476_v0, 5  ;;  %v287_v25 = vshrl.u32 %v206_v1, 16  ;;  %v1815_v57 = vld [vmem:[%s2439_s13 + $0x18] sm:$0xf] }
  0x33   : > { %v451_v12 = vsel %vm2493_vm5, %v446_v2, %v450_v58  ;;  %v290_v33 = vshll.u32 %v206_v1, 16  ;;  %v301_v36 = vshrl.u32 %v207_v7, 16  ;;  %v1848_v38 = vcombine.low %v206_v1, %v207_v7  ;;  %v2606_v58 = vld [vmem:[%s2439_s13 + $0x20] sm:$0xf]  ;;  %v221_v1 = vld [vmem:[%s2439_s13 + $0x14] sm:$0x1] }
  0x34   : > { %v1884_v30 = vcombine.low %v437_v11, %v451_v12  ;;  %v465_v39 = vsel %vm2493_vm5, %v460_v14, %v464_v3  ;;  %v474_v40 = vrot.slane %v473_v15, 4  ;;  %v304_v41 = vshll.u32 %v207_v7, 16  ;;  %v222_v6 = vld [vmem:[%s2439_s13 + $0x1c] sm:$0x1] }
  0x35   : > { %v315_v42 = vshrl.u32 %v208_v27, 16  ;;  %2033 = vmatprep.mubr.msk.bf16.mxu1 %vm641_vm2, %v1848_v38  ;;  %v318_v44 = vshll.u32 %v208_v27, 16  ;;  %v329_v45 = vshrl.u32 %v209_v29, 16  ;;  %v332_v48 = vshll.u32 %v209_v29, 16  ;;  %v1817_v38 = vld [vmem:[%s2439_s13 + $0x28] sm:$0xf] }
  0x36   : > { %2073 = vmatprep.mubr.msk.bf16.mxu0 %vm641_vm2, %v1884_v30  ;;  %v1849_v49 = vcombine.low %v208_v27, %v209_v29  ;;  %v275_v52 = vrot.slane %v273_v50, 4  ;;  %v278_v53 = vrot.slane %v276_v61, 5  ;;  %v479_v54 = vsel %vm2493_vm5, %v474_v40, %v478_v19  ;;  %v220_v50 = vld [vmem:[%s2439_s13 + $0xc] sm:$0x1] }
  0x37   : > { %v507_v17 = vshrl.u32 %v2589_v43, 16  ;;  %v1885_v18 = vcombine.low %v465_v39, %v479_v54  ;;  %v2599_v55 = vrot.slane %v287_v25, 4  ;;  %v2601_v56 = vrot.slane %v290_v33, 5 }
  0x38   : > { %2034 = vmatmul.mubr.msk.bf16.gmra.mrb[4].mxu1 %vm641_vm2, %v1849_v49  ;;  %v2611_v60 = vand.u32 %v1908_v37, %v2420_v4  ;;  %v2613_v61 = vrot.slane %v301_v36, 4  ;;  %v2615_v62 = vrot.slane %v304_v41, 5  ;;  %v2617_v63 = vrot.slane %v315_v42, 4 }
  0x39   : > { %v1891_v0 = vcombine.low %v2589_v43, %v2594_v51  ;;  %2074 = vmatmul.mubr.msk.bf16.gmra.mrb[4].mxu0 %vm641_vm2, %v1885_v18  ;;  %v2623_v2 = vrot.slane %v318_v44, 5  ;;  %v2625_v3 = vrot.slane %v329_v45, 4  ;;  %v2627_v5 = vrot.slane %v332_v48, 5 }
  0x3a   : > { %v510_v4 = vshll.u32 %v2589_v43, 16  ;;  %v2631_v7 = vrot.slane %v507_v17, 4  ;;  %v521_v11 = vshrl.u32 %v2594_v51, 16  ;;  %v524_v14 = vshll.u32 %v2594_v51, 16 }
  0x3b   : > { %2079 = vmatprep.mubr.msk.bf16.mxu0 %vm641_vm2, %v1891_v0  ;;  %v535_v12 = vshrl.u32 %v1815_v57, 16  ;;  %v538_v15 = vshll.u32 %v1815_v57, 16  ;;  %v549_v19 = vshrl.u32 %v2606_v58, 16  ;;  %v552_v25 = vshll.u32 %v2606_v58, 16  ;;  %v2671_v0 = vld [vmem:[%s2439_s13 + $0x40] sm:$0xf] }
  0x3c   : > { %v237_v27 = vor.u32 %v2528_v23, %v2526_v20  ;;  %v1892_v29 = vcombine.low %v1815_v57, %v2606_v58  ;;  %v240_v30 = vshll.u32 %v219_v59, 16  ;;  %v251_v33 = vor.u32 %v2547_v35, %v2537_v28  ;;  %v2647_v20 = vld [vmem:[%s2439_s13 + $0x30] sm:$0xf] }
  0x3d   : > { %v254_v36 = vshll.u32 %v220_v50, 16  ;;  %v265_v39 = vor.u32 %v2575_v10, %v2573_v9  ;;  %v268_v40 = vshll.u32 %v221_v1, 16  ;;  %v279_v41 = vor.u32 %v278_v53, %v275_v52  ;;  %v2654_v52 = vld [vmem:[%s2439_s13 + $0x38] sm:$0xf]  ;;  %v223_v1 = vld [vmem:[%s2439_s13 + $0x24] sm:$0x1] }
  0x3e   : > { %v238_v37 = vrot.slane %v237_v27, 4  ;;  %v242_v42 = vrot.slane %v240_v30, 5  ;;  %v252_v43 = vrot.slane %v251_v33, 4  ;;  %v282_v45 = vshll.u32 %v222_v6, 16 }
  0x3f   : > { %v256_v44 = vrot.slane %v254_v36, 5  ;;  %v266_v23 = vrot.slane %v265_v39, 4  ;;  %v270_v48 = vrot.slane %v268_v40, 5  ;;  %v280_v49 = vrot.slane %v279_v41, 4 }
  0x40   : > { %v563_v51 = vshrl.u32 %v1817_v38, 16  ;;  %v243_v28 = vsel %vm2493_vm5, %v238_v37, %v242_v42  ;;  %v284_v9 = vrot.slane %v282_v45, 5  ;;  %v566_v10 = vshll.u32 %v1817_v38, 16  ;;  %v2230_v37 = vld [vmem:[%s2439_s13 + $0x50] ss:$8 sps:$4 sm:$0xff]  }
  0x41   : > { %v257_v35 = vsel %vm2493_vm5, %v252_v43, %v256_v44  ;;  %v2656_v53 = vrot.slane %v510_v4, 5  ;;  %2080 = vmatmul.mubr.msk.bf16.vlgmr.msra.gmra.mrb[0].mxu0 %vm641_vm2, %v1892_v29  ;;  %v271_v17 = vsel %vm2493_vm5, %v266_v23, %v270_v48  ;;  %v577_v18 = vshrl.u32 %v2647_v20, 16  ;;  %v1829_v48 = vld [vmem:[%s2439_s13 + $0xc] sm:$0x1] }
  0x42   : > { %v1855_v54 = vcombine.low %v243_v28, %v257_v35  ;;  %v2662_v57 = vrot.slane %v521_v11, 4  ;;  %v2664_v58 = vrot.slane %v524_v14, 5  ;;  %2088 = vmatpush3.bf16.msra.mxu0 %v2521_v16  ;;  %v285_v59 = vsel %vm2493_vm5, %v280_v49, %v284_v9  ;;  %v224_v11 = vld [vmem:[%s2439_s13 + $0x2c] sm:$0x1] }
  0x43   : > { %v1893_v50 = vcombine.low %v1817_v38, %v2647_v20  ;;  %v2674_v4 = vrot.slane %v535_v12, 4  ;;  %v2676_v6 = vrot.slane %v538_v15, 5  ;;  %v2678_v27 = vrot.slane %v549_v19, 4  ;;  %2097 = vmatprep.subr.bf16.mxu0 %v2611_v60  ;;  %v225_v15 = vld [vmem:[%s2439_s13 + $0x34] sm:$0x1] }
  0x44   : > { %2039 = vmatprep.mubr.msk.bf16.mxu1 %vm641_vm2, %v1855_v54  ;;  %v1856_v16 = vcombine.low %v271_v17, %v285_v59  ;;  %v2683_v14 = vrot.slane %v552_v25, 5  ;;  %v2685_v29 = vrot.slane %v563_v51, 4  ;;  %v2687_v30 = vrot.slane %v566_v10, 5  ;;  %v226_v38 = vld [vmem:[%s2439_s13 + $0x3c] sm:$0x1] }
  0x45   : > { %v580_v12 = vshll.u32 %v2647_v20, 16  ;;  %2083 = vmatprep.mubr.msk.bf16.mxu0 %vm641_vm2, %v1893_v50  ;;  %v2693_v19 = vrot.slane %v577_v18, 4  ;;  %v1894_v33 = vcombine.low %v2654_v52, %v2671_v0  ;;  %v293_v25 = vor.u32 %v2601_v56, %v2599_v55  ;;  %v2231_v17 = vld [vmem:[%s2439_s13 + $0x60] ss:$8 sps:$4 sm:$0xff]   ;;  %v2234_v18 = vld [vmem:[%s2439_s13 + $0x70] ss:$8 sps:$4 sm:$0xff]  }
  0x46   : > { %2040 = vmatmul.mubr.msk.bf16.vlgmr.msra.gmra.mrb[0].mxu1 %vm641_vm2, %v1856_v16  ;;  %v296_v36 = vshll.u32 %v223_v1, 16  ;;  %v591_v39 = vshrl.u32 %v2654_v52, 16  ;;  %v594_v40 = vshll.u32 %v2654_v52, 16  ;;  %v307_v41 = vor.u32 %v2615_v62, %v2613_v61 }
  0x47   : > { %2048 = vmatpush3.bf16.msra.mxu1 %v2535_v26  ;;  %v310_v42 = vshll.u32 %v224_v11, 16  ;;  %v294_v43 = vrot.slane %v293_v25, 4  ;;  %v321_v55 = vor.u32 %v2623_v2, %v2617_v63  ;;  %v324_v56 = vshll.u32 %v225_v15, 16  ;;  %v1830_v2 = vld [vmem:[%s2439_s13 + $0x14] sm:$0x1] }
  0x48   : > { %v298_v44 = vrot.slane %v296_v36, 5  ;;  %2107 = vmatprep.subr.bf16.mxu1 %v2430_v8  ;;  %v308_v45 = vrot.slane %v307_v41, 4  ;;  %v335_v26 = vor.u32 %v2627_v5, %v2625_v3  ;;  %v338_v23 = vshll.u32 %v226_v38, 16  ;;  %v1832_v25 = vld [vmem:[%s2439_s13 + $0x24] sm:$0x1] }
  0x49   : > { %v312_v20 = vrot.slane %v310_v42, 5  ;;  %v605_v49 = vshrl.u32 %v2671_v0, 16  ;;  %2084 = vmatmul.mubr.msk.bf16.gmra.mrb[4].mxu0 %vm641_vm2, %v1894_v33  ;;  %v322_v62 = vrot.slane %v321_v55, 4  ;;  %v326_v63 = vrot.slane %v324_v56, 5  ;;  %v1836_v41 = vld [vmem:[%s2439_s13 + $0x44] sm:$0x1] }
  0x4a   : > { %v299_v61 = vsel %vm2493_vm5, %v294_v43, %v298_v44  ;;  %v336_v28 = vrot.slane %v335_v26, 4  ;;  %v340_v35 = vrot.slane %v338_v23, 5  ;;  %2089 = vmatprep.mubr.msk.bf16.mxu0 %vm641_vm2, %v2230_v37  ;;  %v1864_v3 = vcombine.low %v2465_v21, %v2468_v22 }
  0x4b   : > { %v313_v51 = vsel %vm2493_vm5, %v308_v45, %v312_v20  ;;  %v608_v5 = vshll.u32 %v2671_v0, 16  ;;  %v327_v10 = vsel %vm2493_vm5, %v322_v62, %v326_v63  ;;  %v513_v52 = vor.u32 %v2656_v53, %v2631_v7  ;;  %v1831_v7 = vld [vmem:[%s2439_s13 + $0x1c] sm:$0x1] }
  0x4c   : > { %v1857_v9 = vcombine.low %v299_v61, %v313_v51  ;;  %v341_v54 = vsel %vm2493_vm5, %v336_v28, %v340_v35  ;;  %v516_v59 = vshll.u32 %v1829_v48, 16  ;;  %v527_v21 = vor.u32 %v2664_v58, %v2662_v57  ;;  %v1833_v57 = vld [vmem:[%s2439_s13 + $0x2c] sm:$0x1]  ;;  %v1834_v58 = vld [vmem:[%s2439_s13 + $0x34] sm:$0x1] }
  0x4d   : > { %v530_v22 = vshll.u32 %v1830_v2, 16  ;;  %v582_v50 = vrot.slane %v580_v12, 5  ;;  %v593_v0 = vrot.slane %v591_v39, 4  ;;  %v1858_v1 = vcombine.low %v327_v10, %v341_v54 }
  0x4e   : > { %2043 = vmatprep.mubr.msk.bf16.mxu1 %vm641_vm2, %v1857_v9  ;;  %v514_v16 = vrot.slane %v513_v52, 4  ;;  %v596_v53 = vrot.slane %v594_v40, 5  ;;  %v518_v11 = vrot.slane %v516_v59, 5  ;;  %v528_v15 = vrot.slane %v527_v21, 4  ;;  %v1835_v40 = vld [vmem:[%s2439_s13 + $0x3c] sm:$0x1] }
  0x4f   : > { %v532_v33 = vrot.slane %v530_v22, 5  ;;  %v607_v36 = vrot.slane %v605_v49, 4  ;;  %v610_v38 = vrot.slane %v608_v5, 5  ;;  %2044 = vmatmul.mubr.msk.bf16.gmra.mrb[4].mxu1 %vm641_vm2, %v1858_v1  ;;  %v541_v12 = vor.u32 %v2676_v6, %v2674_v4  ;;  %v2238_v52 = vld [vmem:[%s2439_s13 + $0xf8] ss:$8 sps:$4 sm:$0xff]  }
  0x50   : > { %2049 = vmatprep.mubr.msk.bf16.mxu1 %vm641_vm2, %v1864_v3  ;;  %v544_v37 = vshll.u32 %v1831_v7, 16  ;;  %v555_v39 = vor.u32 %v2683_v14, %v2678_v27  ;;  %v1865_v42 = vcombine.low %v2479_v31, %v2482_v32  ;;  %v519_v43 = vsel %vm2493_vm5, %v514_v16, %v518_v11  ;;  %v1917_v22 = vld [vmem:[%s2866_s2] ss:$0 sm:$0xff] }
  0x51   : > { %2090 = vmatmul.mubr.msk.bf16.vlgmr.msra.gmra.mrb[0].mxu0 %vm641_vm2, %v2231_v17  ;;  %v558_v44 = vshll.u32 %v1832_v25, 16  ;;  %v569_v55 = vor.u32 %v2687_v30, %v2685_v29  ;;  %v533_v4 = vsel %vm2493_vm5, %v528_v15, %v532_v33  ;;  %v572_v6 = vshll.u32 %v1833_v57, 16  ;;  %v1918_v1 = vld [vmem:[%s2867_s3] ss:$0 sm:$0xff] }
  0x52   : > { %2098 = vmatpush3.bf16.msra.mxu0 %v2611_v60  ;;  %2093 = vmatprep.mubr.msk.bf16.mxu0 %vm641_vm2, %v2234_v18  ;;  %v583_v27 = vor.u32 %v582_v50, %v2693_v19  ;;  %v597_v14 = vor.u32 %v596_v53, %v593_v0  ;;  %v586_v31 = vshll.u32 %v1834_v58, 16  ;;  %v600_v32 = vshll.u32 %v1835_v40, 16  ;;  %v2235_v60 = vld [vmem:[%s2439_s13 + $0x80] ss:$8 sps:$4 sm:$0xff]  }
  0x53   : > { %v611_v56 = vor.u32 %v610_v38, %v607_v36  ;;  %v614_v45 = vshll.u32 %v1836_v41, 16  ;;  %v1866_v20 = vcombine.low %v2516_v13, %v2531_v24  ;;  %v542_v26 = vrot.slane %v541_v12, 4  ;;  %v2239_v18 = vld [vmem:[%s2439_s13 + $0x108] ss:$8 sps:$4 sm:$0xff]   ;;  %s193_s13 = scalar_lea.vmem [#allocation2], %s1778_s12 }
  0x54   : > { %v546_v29 = vrot.slane %v544_v37, 5  ;;  %v556_v30 = vrot.slane %v555_v39, 4  ;;  %v598_v23 = vrot.slane %v597_v14, 4  ;;  %v602_v48 = vrot.slane %v600_v32, 5  ;;  %s1712_s20 = sshll.u32 %s193_s13, 4  ;;  %s2819_s20 = int_to_ptr.vmem [resolvable:$true] %s1712_s20 }
  0x55   : > { %v612_v49 = vrot.slane %v611_v56, 4  ;;  %v616_v61 = vrot.slane %v614_v45, 5  ;;  %v1909_v62 = vcombine.low %v519_v43, %v533_v4  ;;  %v560_v63 = vrot.slane %v558_v44, 5  ;;  %s2272_s19 = scalar_lea.vmem %s2819_s20, 512  ;;  %p2279_p0 = scmp.lt.s32.totalorder %s2819_s20, %s2277_s30 }
  0x56   : > { %v570_v2 = vrot.slane %v569_v55, 4  ;;  %v574_v19 = vrot.slane %v572_v6, 5  ;;  %v584_v51 = vrot.slane %v583_v27, 4  ;;  %v588_v28 = vrot.slane %v586_v31, 5  ;;  %p2273_p11 = scmp.ne.s32.totalorder %s2819_s20, %s2272_s19  ;;  %p2280_p1 = scmp.lt.s32.totalorder %s2278_s5, %s2272_s19 }
  0x57   : > { %2050 = vmatmul.mubr.msk.bf16.vlgmr.msra.gmra.mrb[0].mxu1 %vm641_vm2, %v1865_v42  ;;  %v603_v13 = vsel %vm2493_vm5, %v598_v23, %v602_v48  ;;  %v617_v24 = vsel %vm2493_vm5, %v612_v49, %v616_v61  ;;  %v547_v3 = vsel %vm2493_vm5, %v542_v26, %v546_v29  ;;  %v561_v5 = vsel %vm2493_vm5, %v556_v30, %v560_v63 }
  0x58   : > { %2108 = vmatpush3.bf16.msra.mxu1 %v2430_v8  ;;  %2053 = vmatprep.mubr.msk.bf16.mxu1 %vm641_vm2, %v1866_v20  ;;  %v1912_v35 = vcombine.low %v603_v13, %v617_v24  ;;  %v1867_v9 = vcombine.low %v2545_v34, %v2560_v46  ;;  %v575_v8 = vsel %vm2493_vm5, %v570_v2, %v574_v19  ;;  %p2274_p12 = pnand %p2273_p11, %p2403_p5  ;;  %p2281_p2 = por %p2280_p1, %p2279_p0 }
  0x59   : > { %2094 = vmatmul.mubr.msk.bf16.gmra.mrb[4].mxu0 %vm641_vm2, %v2235_v60  ;;  %v589_v10 = vsel %vm2493_vm5, %v584_v51, %v588_v28  ;;  %v1910_v54 = vcombine.low %v547_v3, %v561_v5 }
  0x5a   : > { %2099 = vmatprep.mubr.msk.bf16.mxu0 %vm641_vm2, %v1909_v62  ;;  %v1911_v17 = vcombine.low %v575_v8, %v589_v10  ;;  %p2275_p13 = pneg %p2274_p12 }
  0x5c   : > { %p2282_p3 = pnand %p2281_p2, %p2275_p13 }
  0x5f   : > { %2054 = vmatmul.mubr.msk.bf16.gmra.mrb[4].mxu1 %vm641_vm2, %v1867_v9 }
  0x60   : > { %2063 = vmatprep.mubr.msk.bf16.mxu1 %vm641_vm2, %v2238_v52 }
  0x61   : > { %2100 = vmatmul.mubr.msk.bf16.vlgmr.msra.gmra.mrb[0].mxu0 %vm641_vm2, %v1910_v54 }
  0x62   : > { %2103 = vmatprep.mubr.msk.bf16.mxu0 %vm641_vm2, %v1911_v17 }
  0x69   : > { %2104 = vmatmul.mubr.msk.bf16.gmra.mrb[4].mxu0 %vm641_vm2, %v1912_v35 }
  0x6b   : > { %2064 = vmatmul.mubr.msk.bf16.vlgmr.msra.gmra.mrb[4].mxu1 %vm641_vm2, %v2239_v18 }
 0x12a   : > { %v2051_v34 = vpop.f32.mrb[0].mxu1 }
 0x12b   : > { %v999_v46 = vpop.f32.mrb[1].mxu1 }
 0x12c   : > { %v2052_v47 = vpop.f32.mrb[2].mxu1 }
 0x12d   : > { %v1002_v59 = vpop.f32.mrb[3].mxu1 }
 0x134   : > { %v2101_v21 = vpop.f32.mrb[0].mxu0 }
 0x135   : > { %v2109_v50 = vadd.f32 %v2101_v21, %v2051_v34  ;;  %v1533_v0 = vpop.f32.mrb[1].mxu0 }
 0x136   : > { %v2110_v16 = vadd.f32 %v1533_v0, %v999_v46  ;;  %v2102_v7 = vpop.f32.mrb[2].mxu0 }
 0x137   : > { %v1581_v53 = vmul.f32 %v2109_v50, %v1917_v22  ;;  %v2111_v11 = vadd.f32 %v2102_v7, %v2052_v47  ;;  %v1536_v15 = vpop.f32.mrb[3].mxu0 }
 0x138   : > { %v1579_v33 = vmul.f32 %v2110_v16, %v1917_v22  ;;  %v2112_v25 = vadd.f32 %v1536_v15, %v1002_v59 }
 0x139   : > { %v2794_v36 = vadd.f32 %v1918_v1, %v1581_v53  ;;  %v1582_v38 = vmul.f32 %v2111_v11, %v1917_v22 }
 0x13a   : > { %v2796_v57 = vadd.f32 %v1918_v1, %v1579_v33  ;;  %v1580_v58 = vmul.f32 %v2112_v25, %v1917_v22 }
 0x13b   : > { %v1921_v12 = vmul.f32 -1.442695, %v2794_v36  ;;  %v2799_v37 = vadd.f32 %v1918_v1, %v1582_v38 }
 0x13c   : > { %v1919_v39 = vmul.f32 -1.442695, %v2796_v57  ;;  %v2802_v40 = vadd.f32 %v1918_v1, %v1580_v58  ;;  %v2105_v41 = vpop.f32.mrb[4].mxu0 }
 0x13d   : > { %2240 = vpow2.f32 %v1921_v12  ;;  %v1922_v42 = vmul.f32 -1.442695, %v2799_v37  ;;  %v1549_v43 = vpop.f32.mrb[5].mxu0 }
 0x13e   : > { %2242 = vpow2.f32 %v1919_v39  ;;  %v1920_v44 = vmul.f32 -1.442695, %v2802_v40  ;;  %v2065_v55 = vpop.f32.mrb[4].mxu1  ;;  %v2106_v4 = vpop.f32.mrb[6].mxu0 }
 0x13f   : > { %2244 = vpow2.f32 %v1922_v42  ;;  %v2113_v6 = vadd.f32 %v2105_v41, %v2065_v55  ;;  %v1125_v27 = vpop.f32.mrb[5].mxu1  ;;  %v1552_v14 = vpop.f32.mrb[7].mxu0 }
 0x140   : > { %2246 = vpow2.f32 %v1920_v44  ;;  %v2114_v31 = vadd.f32 %v1549_v43, %v1125_v27  ;;  %v2066_v32 = vpop.f32.mrb[6].mxu1 }
 0x141   : > { %v1585_v56 = vmul.f32 %v2113_v6, %v1917_v22  ;;  %v2115_v45 = vadd.f32 %v2106_v4, %v2066_v32  ;;  %v1128_v20 = vpop.f32.mrb[7].mxu1 }
 0x142   : > { %v1583_v26 = vmul.f32 %v2114_v31, %v1917_v22  ;;  %v2116_v29 = vadd.f32 %v1552_v14, %v1128_v20 }
 0x143   : > { %v1600_v30 = vadd.f32 %v1918_v1, %v1585_v56  ;;  %v1586_v60 = vmul.f32 %v2115_v45, %v1917_v22 }
 0x144   : > { %v1598_v23 = vadd.f32 %v1918_v1, %v1583_v26  ;;  %v1584_v48 = vmul.f32 %v2116_v29, %v1917_v22 }
 0x145   : > { %v1925_v49 = vmul.f32 -1.442695, %v1600_v30  ;;  %v1601_v61 = vadd.f32 %v1918_v1, %v1586_v60 }
 0x146   : > { %v1923_v62 = vmul.f32 -1.442695, %v1598_v23  ;;  %v1599_v63 = vadd.f32 %v1918_v1, %v1584_v48 }
 0x147   : > { %v2241_v2 = vpop.eup %2240  ;;  %2248 = vpow2.f32 %v1925_v49  ;;  %v1926_v19 = vmul.f32 -1.442695, %v1601_v61 }
 0x148   : > { %v2243_v51 = vpop.eup %2242  ;;  %v1628_v28 = vadd.f32 1.0, %v2241_v2  ;;  %2250 = vpow2.f32 %v1923_v62  ;;  %v1924_v5 = vmul.f32 -1.442695, %v1599_v63 }
 0x149   : > { %v2245_v13 = vpop.eup %2244  ;;  %v1626_v24 = vadd.f32 1.0, %v2243_v51  ;;  %2252 = vpow2.f32 %v1926_v19 }
 0x14a   : > { %v2247_v35 = vpop.eup %2246  ;;  %2254 = vrcp.f32 %v1628_v28  ;;  %v1629_v3 = vadd.f32 1.0, %v2245_v13 }
 0x14b   : > { %2256 = vrcp.f32 %v1626_v24  ;;  %v1627_v9 = vadd.f32 1.0, %v2247_v35 }
 0x14c   : > { %2258 = vrcp.f32 %v1629_v3 }
 0x14d   : > { %2260 = vrcp.f32 %v1627_v9 }
 0x14e   : > { %2262 = vpow2.f32 %v1924_v5 }
 0x151   : > { %v2249_v8 = vpop.eup %2248 }
 0x152   : > { %v2251_v10 = vpop.eup %2250  ;;  %v1632_v52 = vadd.f32 1.0, %v2249_v8 }
 0x153   : > { %v2253_v54 = vpop.eup %2252  ;;  %v1630_v46 = vadd.f32 1.0, %v2251_v10 }
 0x154   : > { %v2255_v17 = vpop.eup %2254  ;;  %2264 = vrcp.f32 %v1632_v52  ;;  %v1633_v18 = vadd.f32 1.0, %v2253_v54 }
 0x155   : > { %v2257_v34 = vpop.eup %2256  ;;  %v1652_v21 = vmul.f32 %v2255_v17, %v2794_v36 }
 0x156   : > { %v2259_v47 = vpop.eup %2258  ;;  %2266 = vrcp.f32 %v1633_v18  ;;  %v1650_v0 = vmul.f32 %v2257_v34, %v2796_v57 }
 0x157   : > { %v2261_v59 = vpop.eup %2260  ;;  %v1653_v22 = vmul.f32 %v2259_v47, %v2799_v37  ;;  %2268 = vrcp.f32 %v1630_v46 }
 0x158   : > { %v2263_v50 = vpop.eup %2262  ;;  %v1651_v1 = vmul.f32 %v2261_v59, %v2802_v40 }
 0x159   : > { %v1957_v16 = vpack.c.bf16 %v1653_v22, %v1652_v21  ;;  %v1631_v7 = vadd.f32 1.0, %v2263_v50 }
 0x15a   : > { %v1952_v53 = vpack.c.bf16 %v1651_v1, %v1650_v0 }
 0x15b   : > { %1969 = vst [vmem:[%s193_s13 + $0x8] sm:$0xff] %v1957_v16   ;;  %2270 = vrcp.f32 %v1631_v7 }
 0x15c   : > { %1953 = vst [vmem:[%s193_s13] sm:$0xff] %v1952_v53  }
 0x15e   : > { %v2265_v11 = vpop.eup %2264 }
 0x15f   : > { %v1656_v33 = vmul.f32 %v2265_v11, %v1600_v30 }
 0x160   : > { %v2267_v15 = vpop.eup %2266 }
 0x161   : > { %v1657_v25 = vmul.f32 %v2267_v15, %v1601_v61  ;;  %v2269_v36 = vpop.eup %2268 }
 0x162   : > { %v1654_v58 = vmul.f32 %v2269_v36, %v1598_v23 }
 0x163   : > { %v1967_v38 = vpack.c.bf16 %v1657_v25, %v1656_v33 }
 0x165   : > { %v2271_v57 = vpop.eup %2270  ;;  %1971 = vst [vmem:[%s193_s13 + $0x18] sm:$0xff] %v1967_v38  }
 0x166   : > { %v1655_v12 = vmul.f32 %v2271_v57, %v1599_v63 }
 0x168   : > { %v1962_v37 = vpack.c.bf16 %v1655_v12, %v1654_v58 }
 0x16a   : > { %1970 = vst [vmem:[%s193_s13 + $0x10] sm:$0xff] %v1962_v37  }
 0x16b   : > { %2285 = shalt.err (!%p2282_p3)
}
 0x16c   : > { %s2286_s6 = scalar_lea.hbm %s2817_s27, 512  ;;  %s2290_s9 = scalar_lea.hbm %s2868_s4, 1024 }
 0x16d   : > { %p2287_p4 = scmp.ne.s32.totalorder %s2817_s27, %s2286_s6  ;;  %p2291_p9 = scmp.lt.u32.totalorder %s2817_s27, %s2868_s4 }
 0x16e   : > { %p2292_p10 = scmp.lt.u32.totalorder %s2290_s9, %s2286_s6  ;;  %p2294_p12 = scmp.lt.u32.totalorder %s2286_s6, %s2817_s27 }
 0x16f   : > { %p2288_p7 = pnand %p2287_p4, %p2403_p5 }
 0x170   : > { %p2293_p11 = por %p2292_p10, %p2291_p9 }
 0x171   : > { %p2289_p8 = pneg %p2288_p7 }
 0x172   : > { %p2295_p13 = por %p2294_p12, %p2293_p11 }
 0x174   : > { %p2296_p0 = pnand %p2295_p13, %p2289_p8 }
 0x176   : > { %2299 = shalt.err (!%p2296_p0)
}
 0x177   : > { %s2338_s12 = smov 64   ;;  %s2339_s13 = smov 4  }
 0x178   : > { %2174 = dma.vmem_to_hbm [thread:$0]  (%p2403_p5), %s2819_s20, 512, %s2817_s27, %s2823_s28, %s2338_s12, %s2338_s12, %s2339_s13  }
 0x179 PF: > { %p2180_p1 = scmp.ge.s32.totalorder %s2334_s18, 2  ;;  %s1727_s14 = sand.u32 1, %s2322_s15  }
 0x17a   : > { %s1728_s22 = scalar_lea.sflag [#allocation3], %s1727_s14 }
 0x17b   : > { %p2177_p2 = pnand %p2180_p1, %p2407_p6 }
 0x17d   : > { %2317 = dma.done.wait (!%p2177_p2), %s1728_s22, 512  }
 0x17e   : > { %2319 = vsyncadd (!%p2177_p2), %s1728_s22, 4294966784  ;;  %p14_p3 = scmp.ge.s32.totalorder %s2390_s21, 4   ;;  %s2873_s15 = smov %s2326_s16 }
 0x17f   : > { %s2874_s16 = smov %s2330_s17  ;;  %s2875_s17 = smov %s2401_s24 }
 0x180   : > { %s2876_s18 = smov %s2390_s21  ;;  %16 = sbr.rel (!%p14_p3) target bundleno = 3 (0x3), region = 84 }
 0x187   :  { %1733 = vsyncpa [#allocation3], 1 }
 0x188   :  { %1735 = vsyncpa [#allocation3 + $0x1], 1 }

</bundles_post_ra>
